<compile_context>
chip_gen: v5e
topology: v5e:2x2
jax: 0.10.0
libtpu: 0.0.40
codegen_flags: <defaults>
</compile_context>

<pallas_src>
import math
import functools

import jax
import jax.numpy as jnp
from jax.experimental import pallas as pl
from jax.experimental.pallas import tpu as pltpu


# ----------------------------------------------------------------------------
# Small synthetic BERT config (bert-base scaled down for a quick TPU run).
# ----------------------------------------------------------------------------
VOCAB_SIZE = 100
HIDDEN = 32
NUM_LAYERS = 2
NUM_HEADS = 4
HEAD_DIM = HIDDEN // NUM_HEADS
INTERMEDIATE = 64
MAX_POS = 16
TYPE_VOCAB = 2
NUM_LABELS = 3
LN_EPS = 1e-12

BATCH = 2
SEQ = 8

# Explicit VMEM budget (review: re-derive tiles for v7x's 64 MiB VMEM; tile
# sizes below keep 2x double-buffered activations + full weights well under
# this on every generation at bert-base scale).
VMEM_LIMIT = 32 * 1024 * 1024


def _row_tile(m):
    """Largest multiple-of-8 row tile <= 256 that divides M and (when possible)
    leaves >= 2 grid steps so both v7x TensorCores get work."""
    for tm in (256, 128, 64, 32, 16, 8):
        if tm <= m // 2 and m % tm == 0:
            return tm
    return m


# ----------------------------------------------------------------------------
# In-kernel math helpers (f32)
# ----------------------------------------------------------------------------
def _erf(x):
    # Abramowitz & Stegun 7.1.26 rational approximation, |error| < 1.5e-7,
    # built only from exp/mul/add/div/where so it is guaranteed to lower.
    # TODO(synk): switch to lax.erf once its Mosaic lowering is guaranteed.
    a1, a2, a3, a4, a5 = (0.254829592, -0.284496736, 1.421413741,
                          -1.453152027, 1.061405429)
    p = 0.3275911
    ax = jnp.where(x >= 0.0, x, -x)
    t = 1.0 / (1.0 + p * ax)
    poly = ((((a5 * t + a4) * t + a3) * t + a2) * t + a1) * t
    y = 1.0 - poly * jnp.exp(-ax * ax)
    return jnp.where(x >= 0.0, y, -y)


def _gelu_exact(x):
    # Exact erf-GELU (HF BERT "gelu"), not the tanh approximation.
    return 0.5 * x * (1.0 + _erf(x * (1.0 / math.sqrt(2.0))))


def _layernorm_f32(y, g, b):
    mu = jnp.mean(y, axis=-1, keepdims=True)
    d = y - mu
    var = jnp.mean(d * d, axis=-1, keepdims=True)
    return d * jax.lax.rsqrt(var + LN_EPS) * g + b


# ----------------------------------------------------------------------------
# Pallas kernels
# ----------------------------------------------------------------------------
def _layernorm_kernel(x_ref, g_ref, b_ref, o_ref):
    o_ref[...] = _layernorm_f32(x_ref[...], g_ref[...], b_ref[...])


def _attn_block_kernel(scale, n_heads, head_dim,
                       x_ref, mask_ref, wqkv_ref, bqkv_ref,
                       wo_ref, bo_ref, g_ref, beta_ref, o_ref):
    """Fused: QKV proj + per-head softmax attention + out proj + residual + LN.

    One grid step = one batch element.  Matmul operands in bf16 (f32 acc);
    softmax and LayerNorm in f32.
    """
    x = x_ref[0]                                   # (S, H) f32
    S, H = x.shape
    mask = mask_ref[0]                             # (1, S) additive mask f32

    xb = x.astype(jnp.bfloat16)
    qkv = jnp.dot(xb, wqkv_ref[...], preferred_element_type=jnp.float32)
    qkv = qkv + bqkv_ref[...]                      # (S, 3H) f32

    acc = jnp.zeros((S, H), jnp.float32)
    for h in range(n_heads):                       # n_heads is small & static
        lo = h * head_dim
        q = qkv[:, lo:lo + head_dim].astype(jnp.bfloat16)
        k = qkv[:, H + lo:H + lo + head_dim].astype(jnp.bfloat16)
        v = qkv[:, 2 * H + lo:2 * H + lo + head_dim].astype(jnp.bfloat16)

        # scores: contract over head_dim without an explicit transpose
        s = jax.lax.dot_general(q, k, (((1,), (1,)), ((), ())),
                                preferred_element_type=jnp.float32)
        s = s * scale + mask                       # (S, S) f32
        s = s - jnp.max(s, axis=-1, keepdims=True)
        p = jnp.exp(s)
        p = p * pl.reciprocal(jnp.sum(p, axis=-1, keepdims=True), approx=True)

        ctx = jnp.dot(p.astype(jnp.bfloat16), v,
                      preferred_element_type=jnp.float32)          # (S, dh)
        # ctx_h @ Wo[h*dh:(h+1)*dh, :] summed over heads == concat(ctx) @ Wo
        acc = acc + jnp.dot(ctx.astype(jnp.bfloat16),
                            wo_ref[lo:lo + head_dim, :],
                            preferred_element_type=jnp.float32)

    attn_out = acc + bo_ref[...]
    # residual + LayerNorm fused (f32)
    o_ref[0] = _layernorm_f32(attn_out + x, g_ref[...], beta_ref[...])


def _ffn_block_kernel(x_ref, w1_ref, b1_ref, w2_ref, b2_ref,
                      g_ref, beta_ref, o_ref):
    """Fused: FFN-in + exact GELU + FFN-out + residual + LN.
    The [TM, INTERMEDIATE] activation never touches HBM."""
    x = x_ref[...]                                 # (TM, H) f32
    h = jnp.dot(x.astype(jnp.bfloat16), w1_ref[...],
                preferred_element_type=jnp.float32)
    h = _gelu_exact(h + b1_ref[...])
    y = jnp.dot(h.astype(jnp.bfloat16), w2_ref[...],
                preferred_element_type=jnp.float32)
    y = y + b2_ref[...] + x                        # residual in f32
    o_ref[...] = _layernorm_f32(y, g_ref[...], beta_ref[...])


def _head_kernel(x_ref, wp_ref, bp_ref, wc_ref, bc_ref, o_ref):
    """Fused pooler (tanh) + classifier.  dropout(p=0.6) is identity in eval."""
    pooled = jnp.tanh(jnp.dot(x_ref[...].astype(jnp.bfloat16), wp_ref[...],
                              preferred_element_type=jnp.float32) + bp_ref[...])
    o_ref[...] = jnp.dot(pooled.astype(jnp.bfloat16), wc_ref[...],
                         preferred_element_type=jnp.float32) + bc_ref[...]


# ----------------------------------------------------------------------------
# Pallas wrappers
# ----------------------------------------------------------------------------
def layernorm(x, gamma, beta):
    """Row-tiled LayerNorm over the last dim; x: [M, H] f32."""
    M, H = x.shape
    tm = _row_tile(M)
    return pl.pallas_call(
        _layernorm_kernel,
        out_shape=jax.ShapeDtypeStruct((M, H), jnp.float32),
        grid=(M // tm,),
        in_specs=[
            pl.BlockSpec((tm, H), lambda i: (i, 0)),
            pl.BlockSpec((1, H), lambda i: (0, 0)),
            pl.BlockSpec((1, H), lambda i: (0, 0)),
        ],
        out_specs=pl.BlockSpec((tm, H), lambda i: (i, 0)),
        compiler_params=pltpu.CompilerParams(
            dimension_semantics=("parallel",),
            vmem_limit_bytes=VMEM_LIMIT),
    )(x, gamma, beta)


def attention_block(x, ext_mask, lp):
    """x: [B, S, H] f32, ext_mask: [B, 1, S] f32 -> [B, S, H] f32."""
    B, S, H = x.shape
    H3 = 3 * H
    kernel = functools.partial(_attn_block_kernel,
                               1.0 / math.sqrt(HEAD_DIM), NUM_HEADS, HEAD_DIM)
    return pl.pallas_call(
        kernel,
        out_shape=jax.ShapeDtypeStruct((B, S, H), jnp.float32),
        grid=(B,),
        in_specs=[
            pl.BlockSpec((1, S, H), lambda b: (b, 0, 0)),   # x
            pl.BlockSpec((1, 1, S), lambda b: (b, 0, 0)),   # additive mask
            pl.BlockSpec((H, H3), lambda b: (0, 0)),        # Wqkv (bf16)
            pl.BlockSpec((1, H3), lambda b: (0, 0)),        # bqkv
            pl.BlockSpec((H, H), lambda b: (0, 0)),         # Wo (bf16)
            pl.BlockSpec((1, H), lambda b: (0, 0)),         # bo
            pl.BlockSpec((1, H), lambda b: (0, 0)),         # ln gamma
            pl.BlockSpec((1, H), lambda b: (0, 0)),         # ln beta
        ],
        out_specs=pl.BlockSpec((1, S, H), lambda b: (b, 0, 0)),
        compiler_params=pltpu.CompilerParams(
            dimension_semantics=("parallel",),
            vmem_limit_bytes=VMEM_LIMIT),
    )(x, ext_mask, lp["wqkv"], lp["bqkv"], lp["wo"], lp["bo"],
      lp["attn_ln_g"], lp["attn_ln_b"])


def ffn_block(x, lp):
    """x: [M, H] f32 -> [M, H] f32; row-tiled, pipelined over M."""
    M, H = x.shape
    I = lp["w1"].shape[1]
    tm = _row_tile(M)
    return pl.pallas_call(
        _ffn_block_kernel,
        out_shape=jax.ShapeDtypeStruct((M, H), jnp.float32),
        grid=(M // tm,),
        in_specs=[
            pl.BlockSpec((tm, H), lambda i: (i, 0)),        # x tile
            pl.BlockSpec((H, I), lambda i: (0, 0)),         # W1 (bf16)
            pl.BlockSpec((1, I), lambda i: (0, 0)),         # b1
            pl.BlockSpec((I, H), lambda i: (0, 0)),         # W2 (bf16)
            pl.BlockSpec((1, H), lambda i: (0, 0)),         # b2
            pl.BlockSpec((1, H), lambda i: (0, 0)),         # ln gamma
            pl.BlockSpec((1, H), lambda i: (0, 0)),         # ln beta
        ],
        out_specs=pl.BlockSpec((tm, H), lambda i: (i, 0)),
        compiler_params=pltpu.CompilerParams(
            dimension_semantics=("parallel",),
            vmem_limit_bytes=VMEM_LIMIT),
    )(x, lp["w1"], lp["b1"], lp["w2"], lp["b2"],
      lp["ffn_ln_g"], lp["ffn_ln_b"])


def pooler_classifier(cls_tok, params):
    """cls_tok: [B, H] f32 -> logits [B, NUM_LABELS] f32 (single tiny call)."""
    B, H = cls_tok.shape
    NL = params["cls_w"].shape[1]
    return pl.pallas_call(
        _head_kernel,
        out_shape=jax.ShapeDtypeStruct((B, NL), jnp.float32),
        grid=(1,),
        in_specs=[
            pl.BlockSpec((B, H), lambda i: (0, 0)),
            pl.BlockSpec((H, H), lambda i: (0, 0)),
            pl.BlockSpec((1, H), lambda i: (0, 0)),
            pl.BlockSpec((H, NL), lambda i: (0, 0)),
            pl.BlockSpec((1, NL), lambda i: (0, 0)),
        ],
        out_specs=pl.BlockSpec((B, NL), lambda i: (0, 0)),
        compiler_params=pltpu.CompilerParams(
            dimension_semantics=("arbitrary",),
            vmem_limit_bytes=VMEM_LIMIT),
    )(cls_tok, params["pooler_w"], params["pooler_b"],
      params["cls_w"], params["cls_b"])


# ----------------------------------------------------------------------------
# Parameter construction (deterministic, synthetic)
# ----------------------------------------------------------------------------
def init_params(key):
    keys = iter(jax.random.split(key, 64))

    def w(shape):
        return (0.02 * jax.random.normal(next(keys), shape)).astype(jnp.float32)

    def zeros(shape):
        return jnp.zeros(shape, jnp.float32)

    def ones(shape):
        return jnp.ones(shape, jnp.float32)

    params = {
        "word_emb": w((VOCAB_SIZE, HIDDEN)),
        "pos_emb": w((MAX_POS, HIDDEN)),
        "type_emb": w((TYPE_VOCAB, HIDDEN)),
        "emb_ln_g": ones((1, HIDDEN)),
        "emb_ln_b": zeros((1, HIDDEN)),
        "layers": [],
        # matmul weights stored in bf16 (f32 accumulation in-kernel)
        "pooler_w": w((HIDDEN, HIDDEN)).astype(jnp.bfloat16),
        "pooler_b": zeros((1, HIDDEN)),
        "cls_w": w((HIDDEN, NUM_LABELS)).astype(jnp.bfloat16),
        "cls_b": zeros((1, NUM_LABELS)),
    }
    for _ in range(NUM_LAYERS):
        qw, kw, vw = (w((HIDDEN, HIDDEN)), w((HIDDEN, HIDDEN)),
                      w((HIDDEN, HIDDEN)))
        params["layers"].append({
            # fused QKV projection: single lane-dense [H, 3H] matmul
            "wqkv": jnp.concatenate([qw, kw, vw], axis=1).astype(jnp.bfloat16),
            "bqkv": zeros((1, 3 * HIDDEN)),
            "wo": w((HIDDEN, HIDDEN)).astype(jnp.bfloat16),
            "bo": zeros((1, HIDDEN)),
            "attn_ln_g": ones((1, HIDDEN)),
            "attn_ln_b": zeros((1, HIDDEN)),
            "w1": w((HIDDEN, INTERMEDIATE)).astype(jnp.bfloat16),
            "b1": zeros((1, INTERMEDIATE)),
            "w2": w((INTERMEDIATE, HIDDEN)).astype(jnp.bfloat16),
            "b2": zeros((1, HIDDEN)),
            "ffn_ln_g": ones((1, HIDDEN)),
            "ffn_ln_b": zeros((1, HIDDEN)),
        })
    return params


# ----------------------------------------------------------------------------
# Forward pass (== BertForSequenceClassificationCustom.forward, eval mode)
# ----------------------------------------------------------------------------
def bert_classifier_forward(params, input_ids, attention_mask):
    B, S = input_ids.shape
    M = B * S

    # --- embeddings (gathers are plain-JAX glue; token_type_ids = 0) ---
    word = params["word_emb"][input_ids]                       # [B, S, H]
    pos = params["pos_emb"][:S][None, :, :]                    # [1, S, H]
    typ = params["type_emb"][0][None, None, :]                 # [1, 1, H]
    x = (word + pos + typ).reshape(M, HIDDEN)
    x = layernorm(x, params["emb_ln_g"], params["emb_ln_b"])

    # additive attention mask, HF convention: (1 - mask) * -10000  -> [B, 1, S]
    ext_mask = ((1.0 - attention_mask.astype(jnp.float32))
                * -10000.0)[:, None, :]

    # --- encoder layers: 2 fused Pallas kernels per layer ---
    for lp in params["layers"]:
        x = attention_block(x.reshape(B, S, HIDDEN), ext_mask, lp)
        x = ffn_block(x.reshape(M, HIDDEN), lp)

    # --- pooler (tanh on CLS token) + dropout(identity in eval) + classifier ---
    cls_tok = x.reshape(B, S, HIDDEN)[:, 0, :]                 # [B, H]
    logits = pooler_classifier(cls_tok, params)                # [B, NUM_LABELS]
    return logits


# ----------------------------------------------------------------------------
if __name__ == "__main__":
    key = jax.random.PRNGKey(0)
    pkey, dkey = jax.random.split(key)

    params = init_params(pkey)
    input_ids = jax.random.randint(dkey, (BATCH, SEQ), 0, VOCAB_SIZE,
                                   dtype=jnp.int32)
    attention_mask = jnp.ones((BATCH, SEQ), dtype=jnp.int32)

    logits = jax.jit(bert_classifier_forward)(params, input_ids, attention_mask)
    jax.block_until_ready(logits)

    assert logits.shape == (BATCH, NUM_LABELS)
    assert bool(jnp.all(jnp.isfinite(logits)))
    print("KERNEL_OK")
</pallas_src>

<mosaic_0001>
module attributes {stable_mosaic.version = 11 : i64} {
  func.func @_layernorm_kernel(%arg0: i32, %arg1: memref<8x32xf32, #tpu.memory_space<vmem>>, %arg2: memref<1x32xf32, #tpu.memory_space<vmem>>, %arg3: memref<1x32xf32, #tpu.memory_space<vmem>>, %arg4: memref<8x32xf32, #tpu.memory_space<vmem>>) attributes {dimension_semantics = [#tpu.dimension_semantics<parallel>], iteration_bounds = array<i64: 2>, scalar_prefetch = 0 : i64, scratch_operands = 0 : i64, tpu.core_type = #tpu.core_type<tc>, window_params = [{transform_indices = @transform_0, window_bounds = array<i64: 8, 32>}, {pipeline_mode = #tpu.pipeline_mode<synchronous>, transform_indices = @transform_1, window_bounds = array<i64: 1, 32>}, {pipeline_mode = #tpu.pipeline_mode<synchronous>, transform_indices = @transform_2, window_bounds = array<i64: 1, 32>}, {transform_indices = @transform_3, window_bounds = array<i64: 8, 32>}]} {
    %c0 = arith.constant 0 : index
    %c0_0 = arith.constant 0 : index
    %0 = vector.load %arg1[%c0, %c0_0] : memref<8x32xf32, #tpu.memory_space<vmem>>, vector<8x32xf32>
    %c0_1 = arith.constant 0 : index
    %c0_2 = arith.constant 0 : index
    %1 = vector.load %arg2[%c0_1, %c0_2] : memref<1x32xf32, #tpu.memory_space<vmem>>, vector<1x32xf32>
    %c0_3 = arith.constant 0 : index
    %c0_4 = arith.constant 0 : index
    %2 = vector.load %arg3[%c0_3, %c0_4] : memref<1x32xf32, #tpu.memory_space<vmem>>, vector<1x32xf32>
    %cst = arith.constant dense<0.000000e+00> : vector<8xf32>
    %3 = vector.multi_reduction <add>, %0, %cst [1] : vector<8x32xf32> to vector<8xf32>
    %4 = vector.shape_cast %3 : vector<8xf32> to vector<8x1xf32>
    %cst_5 = arith.constant 3.200000e+01 : f32
    %5 = vector.broadcast %cst_5 : f32 to vector<8x1xf32>
    %6 = arith.divf %4, %5 : vector<8x1xf32>
    %7 = vector.broadcast %6 : vector<8x1xf32> to vector<8x32xf32>
    %8 = arith.subf %0, %7 : vector<8x32xf32>
    %9 = arith.mulf %8, %8 : vector<8x32xf32>
    %cst_6 = arith.constant dense<0.000000e+00> : vector<8xf32>
    %10 = vector.multi_reduction <add>, %9, %cst_6 [1] : vector<8x32xf32> to vector<8xf32>
    %11 = vector.shape_cast %10 : vector<8xf32> to vector<8x1xf32>
    %cst_7 = arith.constant 3.200000e+01 : f32
    %12 = vector.broadcast %cst_7 : f32 to vector<8x1xf32>
    %13 = arith.divf %11, %12 : vector<8x1xf32>
    %cst_8 = arith.constant 9.99999996E-13 : f32
    %14 = vector.broadcast %cst_8 : f32 to vector<8x1xf32>
    %15 = arith.addf %13, %14 : vector<8x1xf32>
    %16 = math.rsqrt %15 : vector<8x1xf32>
    %17 = vector.broadcast %16 : vector<8x1xf32> to vector<8x32xf32>
    %18 = arith.mulf %8, %17 : vector<8x32xf32>
    %19 = vector.broadcast %1 : vector<1x32xf32> to vector<8x32xf32>
    %20 = arith.mulf %18, %19 : vector<8x32xf32>
    %21 = vector.broadcast %2 : vector<1x32xf32> to vector<8x32xf32>
    %22 = arith.addf %20, %21 : vector<8x32xf32>
    %c0_9 = arith.constant 0 : index
    %c0_10 = arith.constant 0 : index
    %23 = vector.load %arg4[%c0_9, %c0_10] : memref<8x32xf32, #tpu.memory_space<vmem>>, vector<8x32xf32>
    tpu.vector_store %arg4[%c0_9, %c0_10], %22 {strides = array<i32>} : memref<8x32xf32, #tpu.memory_space<vmem>>, vector<8x32xf32>,
    return
  }
  func.func @transform_0(%arg0: i32) -> (i32, i32) {
    %c0_i32 = arith.constant 0 : i32
    %c0_i32_0 = arith.constant 0 : i32
    return %arg0, %c0_i32 : i32, i32
  }
  func.func @transform_1(%arg0: i32) -> (i32, i32) {
    %c0_i32 = arith.constant 0 : i32
    %c0_i32_0 = arith.constant 0 : i32
    %c0_i32_1 = arith.constant 0 : i32
    return %c0_i32, %c0_i32_0 : i32, i32
  }
  func.func @transform_2(%arg0: i32) -> (i32, i32) {
    %c0_i32 = arith.constant 0 : i32
    %c0_i32_0 = arith.constant 0 : i32
    %c0_i32_1 = arith.constant 0 : i32
    return %c0_i32, %c0_i32_0 : i32, i32
  }
  func.func @transform_3(%arg0: i32) -> (i32, i32) {
    %c0_i32 = arith.constant 0 : i32
    %c0_i32_0 = arith.constant 0 : i32
    return %arg0, %c0_i32 : i32, i32
  }
}

module attributes {stable_mosaic.version = 11 : i64} {
  func.func @_ffn_block_kernel(%arg0: i32, %arg1: memref<8x32xf32, #tpu.memory_space<vmem>>, %arg2: memref<32x64xbf16, #tpu.memory_space<vmem>>, %arg3: memref<1x64xf32, #tpu.memory_space<vmem>>, %arg4: memref<64x32xbf16, #tpu.memory_space<vmem>>, %arg5: memref<1x32xf32, #tpu.memory_space<vmem>>, %arg6: memref<1x32xf32, #tpu.memory_space<vmem>>, %arg7: memref<1x32xf32, #tpu.memory_space<vmem>>, %arg8: memref<8x32xf32, #tpu.memory_space<vmem>>) attributes {dimension_semantics = [#tpu.dimension_semantics<parallel>], iteration_bounds = array<i64: 2>, scalar_prefetch = 0 : i64, scratch_operands = 0 : i64, tpu.core_type = #tpu.core_type<tc>, window_params = [{transform_indices = @transform_0, window_bounds = array<i64: 8, 32>}, {pipeline_mode = #tpu.pipeline_mode<synchronous>, transform_indices = @transform_1, window_bounds = array<i64: 32, 64>}, {pipeline_mode = #tpu.pipeline_mode<synchronous>, transform_indices = @transform_2, window_bounds = array<i64: 1, 64>}, {pipeline_mode = #tpu.pipeline_mode<synchronous>, transform_indices = @transform_3, window_bounds = array<i64: 64, 32>}, {pipeline_mode = #tpu.pipeline_mode<synchronous>, transform_indices = @transform_4, window_bounds = array<i64: 1, 32>}, {pipeline_mode = #tpu.pipeline_mode<synchronous>, transform_indices = @transform_5, window_bounds = array<i64: 1, 32>}, {pipeline_mode = #tpu.pipeline_mode<synchronous>, transform_indices = @transform_6, window_bounds = array<i64: 1, 32>}, {transform_indices = @transform_7, window_bounds = array<i64: 8, 32>}]} {
    %c0 = arith.constant 0 : index
    %c0_0 = arith.constant 0 : index
    %0 = vector.load %arg1[%c0, %c0_0] : memref<8x32xf32, #tpu.memory_space<vmem>>, vector<8x32xf32>
    %1 = arith.truncf %0 : vector<8x32xf32> to vector<8x32xbf16>
    %c0_1 = arith.constant 0 : index
    %c0_2 = arith.constant 0 : index
    %2 = vector.load %arg2[%c0_1, %c0_2] : memref<32x64xbf16, #tpu.memory_space<vmem>>, vector<32x64xbf16>
    %cst = arith.constant dense<0.000000e+00> : vector<8x64xf32>
    %3 = tpu.matmul %1, %2, %cst {dimension_numbers = #tpu.dot_dimension_numbers<[1], [0], [0], [1], [0, 0, 1, 1], [], []>} : vector<8x32xbf16>, vector<32x64xbf16>, vector<8x64xf32> -> vector<8x64xf32>
    %c0_3 = arith.constant 0 : index
    %c0_4 = arith.constant 0 : index
    %4 = vector.load %arg3[%c0_3, %c0_4] : memref<1x64xf32, #tpu.memory_space<vmem>>, vector<1x64xf32>
    %5 = vector.broadcast %4 : vector<1x64xf32> to vector<8x64xf32>
    %6 = arith.addf %3, %5 : vector<8x64xf32>
    %cst_5 = arith.constant 5.000000e-01 : f32
    %7 = vector.broadcast %cst_5 : f32 to vector<8x64xf32>
    %8 = arith.mulf %7, %6 : vector<8x64xf32>
    %cst_6 = arith.constant 0.707106769 : f32
    %9 = vector.broadcast %cst_6 : f32 to vector<8x64xf32>
    %10 = arith.mulf %6, %9 : vector<8x64xf32>
    %cst_7 = arith.constant 0.000000e+00 : f32
    %11 = vector.broadcast %cst_7 : f32 to vector<8x64xf32>
    %12 = arith.cmpf oge, %10, %11 : vector<8x64xf32>
    %cst_8 = arith.constant 0.000000e+00 : f32
    %13 = vector.broadcast %cst_8 : f32 to vector<8x64xf32>
    %14 = arith.subf %13, %10 : vector<8x64xf32>
    %15 = arith.select %12, %10, %14 : vector<8x64xi1>, vector<8x64xf32>
    %cst_9 = arith.constant 0.327591091 : f32
    %16 = vector.broadcast %cst_9 : f32 to vector<8x64xf32>
    %17 = arith.mulf %16, %15 : vector<8x64xf32>
    %cst_10 = arith.constant 1.000000e+00 : f32
    %18 = vector.broadcast %cst_10 : f32 to vector<8x64xf32>
    %19 = arith.addf %18, %17 : vector<8x64xf32>
    %cst_11 = arith.constant 1.000000e+00 : f32
    %20 = vector.broadcast %cst_11 : f32 to vector<8x64xf32>
    %21 = arith.divf %20, %19 : vector<8x64xf32>
    %cst_12 = arith.constant 1.06140542 : f32
    %22 = vector.broadcast %cst_12 : f32 to vector<8x64xf32>
    %23 = arith.mulf %22, %21 : vector<8x64xf32>
    %cst_13 = arith.constant -1.45315206 : f32
    %24 = vector.broadcast %cst_13 : f32 to vector<8x64xf32>
    %25 = arith.addf %23, %24 : vector<8x64xf32>
    %26 = arith.mulf %25, %21 : vector<8x64xf32>
    %cst_14 = arith.constant 1.42141378 : f32
    %27 = vector.broadcast %cst_14 : f32 to vector<8x64xf32>
    %28 = arith.addf %26, %27 : vector<8x64xf32>
    %29 = arith.mulf %28, %21 : vector<8x64xf32>
    %cst_15 = arith.constant -0.284496725 : f32
    %30 = vector.broadcast %cst_15 : f32 to vector<8x64xf32>
    %31 = arith.addf %29, %30 : vector<8x64xf32>
    %32 = arith.mulf %31, %21 : vector<8x64xf32>
    %cst_16 = arith.constant 0.254829586 : f32
    %33 = vector.broadcast %cst_16 : f32 to vector<8x64xf32>
    %34 = arith.addf %32, %33 : vector<8x64xf32>
    %35 = arith.mulf %34, %21 : vector<8x64xf32>
    %cst_17 = arith.constant 0.000000e+00 : f32
    %36 = vector.broadcast %cst_17 : f32 to vector<8x64xf32>
    %37 = arith.subf %36, %15 : vector<8x64xf32>
    %38 = arith.mulf %37, %15 : vector<8x64xf32>
    %39 = math.exp %38 : vector<8x64xf32>
    %40 = arith.mulf %35, %39 : vector<8x64xf32>
    %cst_18 = arith.constant 1.000000e+00 : f32
    %41 = vector.broadcast %cst_18 : f32 to vector<8x64xf32>
    %42 = arith.subf %41, %40 : vector<8x64xf32>
    %cst_19 = arith.constant 0.000000e+00 : f32
    %43 = vector.broadcast %cst_19 : f32 to vector<8x64xf32>
    %44 = arith.cmpf oge, %10, %43 : vector<8x64xf32>
    %cst_20 = arith.constant 0.000000e+00 : f32
    %45 = vector.broadcast %cst_20 : f32 to vector<8x64xf32>
    %46 = arith.subf %45, %42 : vector<8x64xf32>
    %47 = arith.select %44, %42, %46 : vector<8x64xi1>, vector<8x64xf32>
    %cst_21 = arith.constant 1.000000e+00 : f32
    %48 = vector.broadcast %cst_21 : f32 to vector<8x64xf32>
    %49 = arith.addf %48, %47 : vector<8x64xf32>
    %50 = arith.mulf %8, %49 : vector<8x64xf32>
    %51 = arith.truncf %50 : vector<8x64xf32> to vector<8x64xbf16>
    %c0_22 = arith.constant 0 : index
    %c0_23 = arith.constant 0 : index
    %52 = vector.load %arg4[%c0_22, %c0_23] : memref<64x32xbf16, #tpu.memory_space<vmem>>, vector<64x32xbf16>
    %cst_24 = arith.constant dense<0.000000e+00> : vector<8x32xf32>
    %53 = tpu.matmul %51, %52, %cst_24 {dimension_numbers = #tpu.dot_dimension_numbers<[1], [0], [0], [1], [0, 0, 1, 1], [], []>} : vector<8x64xbf16>, vector<64x32xbf16>, vector<8x32xf32> -> vector<8x32xf32>
    %c0_25 = arith.constant 0 : index
    %c0_26 = arith.constant 0 : index
    %54 = vector.load %arg5[%c0_25, %c0_26] : memref<1x32xf32, #tpu.memory_space<vmem>>, vector<1x32xf32>
    %55 = vector.broadcast %54 : vector<1x32xf32> to vector<8x32xf32>
    %56 = arith.addf %53, %55 : vector<8x32xf32>
    %57 = arith.addf %56, %0 : vector<8x32xf32>
    %c0_27 = arith.constant 0 : index
    %c0_28 = arith.constant 0 : index
    %58 = vector.load %arg6[%c0_27, %c0_28] : memref<1x32xf32, #tpu.memory_space<vmem>>, vector<1x32xf32>
    %c0_29 = arith.constant 0 : index
    %c0_30 = arith.constant 0 : index
    %59 = vector.load %arg7[%c0_29, %c0_30] : memref<1x32xf32, #tpu.memory_space<vmem>>, vector<1x32xf32>
    %cst_31 = arith.constant dense<0.000000e+00> : vector<8xf32>
    %60 = vector.multi_reduction <add>, %57, %cst_31 [1] : vector<8x32xf32> to vector<8xf32>
    %61 = vector.shape_cast %60 : vector<8xf32> to vector<8x1xf32>
    %cst_32 = arith.constant 3.200000e+01 : f32
    %62 = vector.broadcast %cst_32 : f32 to vector<8x1xf32>
    %63 = arith.divf %61, %62 : vector<8x1xf32>
    %64 = vector.broadcast %63 : vector<8x1xf32> to vector<8x32xf32>
    %65 = arith.subf %57, %64 : vector<8x32xf32>
    %66 = arith.mulf %65, %65 : vector<8x32xf32>
    %cst_33 = arith.constant dense<0.000000e+00> : vector<8xf32>
    %67 = vector.multi_reduction <add>, %66, %cst_33 [1] : vector<8x32xf32> to vector<8xf32>
    %68 = vector.shape_cast %67 : vector<8xf32> to vector<8x1xf32>
    %cst_34 = arith.constant 3.200000e+01 : f32
    %69 = vector.broadcast %cst_34 : f32 to vector<8x1xf32>
    %70 = arith.divf %68, %69 : vector<8x1xf32>
    %cst_35 = arith.constant 9.99999996E-13 : f32
    %71 = vector.broadcast %cst_35 : f32 to vector<8x1xf32>
    %72 = arith.addf %70, %71 : vector<8x1xf32>
    %73 = math.rsqrt %72 : vector<8x1xf32>
    %74 = vector.broadcast %73 : vector<8x1xf32> to vector<8x32xf32>
    %75 = arith.mulf %65, %74 : vector<8x32xf32>
    %76 = vector.broadcast %58 : vector<1x32xf32> to vector<8x32xf32>
    %77 = arith.mulf %75, %76 : vector<8x32xf32>
    %78 = vector.broadcast %59 : vector<1x32xf32> to vector<8x32xf32>
    %79 = arith.addf %77, %78 : vector<8x32xf32>
    %c0_36 = arith.constant 0 : index
    %c0_37 = arith.constant 0 : index
    %80 = vector.load %arg8[%c0_36, %c0_37] : memref<8x32xf32, #tpu.memory_space<vmem>>, vector<8x32xf32>
    tpu.vector_store %arg8[%c0_36, %c0_37], %79 {strides = array<i32>} : memref<8x32xf32, #tpu.memory_space<vmem>>, vector<8x32xf32>,
    return
  }
  func.func @transform_0(%arg0: i32) -> (i32, i32) {
    %c0_i32 = arith.constant 0 : i32
    %c0_i32_0 = arith.constant 0 : i32
    return %arg0, %c0_i32 : i32, i32
  }
  func.func @transform_1(%arg0: i32) -> (i32, i32) {
    %c0_i32 = arith.constant 0 : i32
    %c0_i32_0 = arith.constant 0 : i32
    %c0_i32_1 = arith.constant 0 : i32
    return %c0_i32, %c0_i32_0 : i32, i32
  }
  func.func @transform_2(%arg0: i32) -> (i32, i32) {
    %c0_i32 = arith.constant 0 : i32
    %c0_i32_0 = arith.constant 0 : i32
    %c0_i32_1 = arith.constant 0 : i32
    return %c0_i32, %c0_i32_0 : i32, i32
  }
  func.func @transform_3(%arg0: i32) -> (i32, i32) {
    %c0_i32 = arith.constant 0 : i32
    %c0_i32_0 = arith.constant 0 : i32
    %c0_i32_1 = arith.constant 0 : i32
    return %c0_i32, %c0_i32_0 : i32, i32
  }
  func.func @transform_4(%arg0: i32) -> (i32, i32) {
    %c0_i32 = arith.constant 0 : i32
    %c0_i32_0 = arith.constant 0 : i32
    %c0_i32_1 = arith.constant 0 : i32
    return %c0_i32, %c0_i32_0 : i32, i32
  }
  func.func @transform_5(%arg0: i32) -> (i32, i32) {
    %c0_i32 = arith.constant 0 : i32
    %c0_i32_0 = arith.constant 0 : i32
    %c0_i32_1 = arith.constant 0 : i32
    return %c0_i32, %c0_i32_0 : i32, i32
  }
  func.func @transform_6(%arg0: i32) -> (i32, i32) {
    %c0_i32 = arith.constant 0 : i32
    %c0_i32_0 = arith.constant 0 : i32
    %c0_i32_1 = arith.constant 0 : i32
    return %c0_i32, %c0_i32_0 : i32, i32
  }
  func.func @transform_7(%arg0: i32) -> (i32, i32) {
    %c0_i32 = arith.constant 0 : i32
    %c0_i32_0 = arith.constant 0 : i32
    return %arg0, %c0_i32 : i32, i32
  }
}

module attributes {stable_mosaic.version = 11 : i64} {
  func.func @_attn_block_kernel(%arg0: i32, %arg1: memref<1x8x32xf32, #tpu.memory_space<vmem>>, %arg2: memref<1x1x8xf32, #tpu.memory_space<vmem>>, %arg3: memref<32x96xbf16, #tpu.memory_space<vmem>>, %arg4: memref<1x96xf32, #tpu.memory_space<vmem>>, %arg5: memref<32x32xbf16, #tpu.memory_space<vmem>>, %arg6: memref<1x32xf32, #tpu.memory_space<vmem>>, %arg7: memref<1x32xf32, #tpu.memory_space<vmem>>, %arg8: memref<1x32xf32, #tpu.memory_space<vmem>>, %arg9: memref<1x8x32xf32, #tpu.memory_space<vmem>>) attributes {dimension_semantics = [#tpu.dimension_semantics<parallel>], iteration_bounds = array<i64: 2>, scalar_prefetch = 0 : i64, scratch_operands = 0 : i64, tpu.core_type = #tpu.core_type<tc>, window_params = [{transform_indices = @transform_0, window_bounds = array<i64: 1, 8, 32>}, {transform_indices = @transform_1, window_bounds = array<i64: 1, 1, 8>}, {pipeline_mode = #tpu.pipeline_mode<synchronous>, transform_indices = @transform_2, window_bounds = array<i64: 32, 96>}, {pipeline_mode = #tpu.pipeline_mode<synchronous>, transform_indices = @transform_3, window_bounds = array<i64: 1, 96>}, {pipeline_mode = #tpu.pipeline_mode<synchronous>, transform_indices = @transform_4, window_bounds = array<i64: 32, 32>}, {pipeline_mode = #tpu.pipeline_mode<synchronous>, transform_indices = @transform_5, window_bounds = array<i64: 1, 32>}, {pipeline_mode = #tpu.pipeline_mode<synchronous>, transform_indices = @transform_6, window_bounds = array<i64: 1, 32>}, {pipeline_mode = #tpu.pipeline_mode<synchronous>, transform_indices = @transform_7, window_bounds = array<i64: 1, 32>}, {transform_indices = @transform_8, window_bounds = array<i64: 1, 8, 32>}]} {
    %c0 = arith.constant 0 : index
    %c0_0 = arith.constant 0 : index
    %c0_1 = arith.constant 0 : index
    %0 = vector.load %arg1[%c0, %c0_0, %c0_1] : memref<1x8x32xf32, #tpu.memory_space<vmem>>, vector<1x8x32xf32>
    %1 = vector.shape_cast %0 : vector<1x8x32xf32> to vector<8x32xf32>
    %c0_2 = arith.constant 0 : index
    %c0_3 = arith.constant 0 : index
    %c0_4 = arith.constant 0 : index
    %2 = vector.load %arg2[%c0_2, %c0_3, %c0_4] : memref<1x1x8xf32, #tpu.memory_space<vmem>>, vector<1x1x8xf32>
    %3 = vector.shape_cast %2 : vector<1x1x8xf32> to vector<1x8xf32>
    %4 = arith.truncf %1 : vector<8x32xf32> to vector<8x32xbf16>
    %c0_5 = arith.constant 0 : index
    %c0_6 = arith.constant 0 : index
    %5 = vector.load %arg3[%c0_5, %c0_6] : memref<32x96xbf16, #tpu.memory_space<vmem>>, vector<32x96xbf16>
    %cst = arith.constant dense<0.000000e+00> : vector<8x96xf32>
    %6 = tpu.matmul %4, %5, %cst {dimension_numbers = #tpu.dot_dimension_numbers<[1], [0], [0], [1], [0, 0, 1, 1], [], []>} : vector<8x32xbf16>, vector<32x96xbf16>, vector<8x96xf32> -> vector<8x96xf32>
    %c0_7 = arith.constant 0 : index
    %c0_8 = arith.constant 0 : index
    %7 = vector.load %arg4[%c0_7, %c0_8] : memref<1x96xf32, #tpu.memory_space<vmem>>, vector<1x96xf32>
    %8 = vector.broadcast %7 : vector<1x96xf32> to vector<8x96xf32>
    %9 = arith.addf %6, %8 : vector<8x96xf32>
    %cst_9 = arith.constant 0.000000e+00 : f32
    %10 = vector.broadcast %cst_9 : f32 to vector<8x32xf32>
    %11 = vector.extract_strided_slice %9 {offsets = [0, 0], sizes = [8, 8], strides = [1, 1]} : vector<8x96xf32> to vector<8x8xf32>
    %12 = arith.truncf %11 : vector<8x8xf32> to vector<8x8xbf16>
    %13 = vector.extract_strided_slice %9 {offsets = [0, 32], sizes = [8, 8], strides = [1, 1]} : vector<8x96xf32> to vector<8x8xf32>
    %14 = arith.truncf %13 : vector<8x8xf32> to vector<8x8xbf16>
    %15 = vector.extract_strided_slice %9 {offsets = [0, 64], sizes = [8, 8], strides = [1, 1]} : vector<8x96xf32> to vector<8x8xf32>
    %16 = arith.truncf %15 : vector<8x8xf32> to vector<8x8xbf16>
    %cst_10 = arith.constant dense<0.000000e+00> : vector<8x8xf32>
    %17 = tpu.matmul %12, %14, %cst_10 {dimension_numbers = #tpu.dot_dimension_numbers<[1], [1], [0], [0], [0, 0, 1, 0], [], []>} : vector<8x8xbf16>, vector<8x8xbf16>, vector<8x8xf32> -> vector<8x8xf32>
    %cst_11 = arith.constant 0.353553385 : f32
    %18 = vector.broadcast %cst_11 : f32 to vector<8x8xf32>
    %19 = arith.mulf %17, %18 : vector<8x8xf32>
    %20 = vector.broadcast %3 : vector<1x8xf32> to vector<8x8xf32>
    %21 = arith.addf %19, %20 : vector<8x8xf32>
    %cst_12 = arith.constant dense<0xFF800000> : vector<8xf32>
    %22 = vector.multi_reduction <maximumf>, %21, %cst_12 [1] : vector<8x8xf32> to vector<8xf32>
    %23 = vector.shape_cast %22 : vector<8xf32> to vector<8x1xf32>
    %24 = vector.broadcast %23 : vector<8x1xf32> to vector<8x8xf32>
    %25 = arith.subf %21, %24 : vector<8x8xf32>
    %26 = math.exp %25 : vector<8x8xf32>
    %cst_13 = arith.constant dense<0.000000e+00> : vector<8xf32>
    %27 = vector.multi_reduction <add>, %26, %cst_13 [1] : vector<8x8xf32> to vector<8xf32>
    %28 = vector.shape_cast %27 : vector<8xf32> to vector<8x1xf32>
    %29 = tpu.reciprocal %28 {approx = true} : vector<8x1xf32> -> vector<8x1xf32>
    %30 = vector.broadcast %29 : vector<8x1xf32> to vector<8x8xf32>
    %31 = arith.mulf %26, %30 : vector<8x8xf32>
    %32 = arith.truncf %31 : vector<8x8xf32> to vector<8x8xbf16>
    %cst_14 = arith.constant dense<0.000000e+00> : vector<8x8xf32>
    %33 = tpu.matmul %32, %16, %cst_14 {dimension_numbers = #tpu.dot_dimension_numbers<[1], [0], [0], [1], [0, 0, 1, 1], [], []>} : vector<8x8xbf16>, vector<8x8xbf16>, vector<8x8xf32> -> vector<8x8xf32>
    %34 = arith.truncf %33 : vector<8x8xf32> to vector<8x8xbf16>
    %c0_15 = arith.constant 0 : index
    %c0_16 = arith.constant 0 : index
    %35 = vector.load %arg5[%c0_15, %c0_16] : memref<32x32xbf16, #tpu.memory_space<vmem>>, vector<8x32xbf16>
    %cst_17 = arith.constant dense<0.000000e+00> : vector<8x32xf32>
    %36 = tpu.matmul %34, %35, %cst_17 {dimension_numbers = #tpu.dot_dimension_numbers<[1], [0], [0], [1], [0, 0, 1, 1], [], []>} : vector<8x8xbf16>, vector<8x32xbf16>, vector<8x32xf32> -> vector<8x32xf32>
    %37 = arith.addf %10, %36 : vector<8x32xf32>
    %38 = vector.extract_strided_slice %9 {offsets = [0, 8], sizes = [8, 8], strides = [1, 1]} : vector<8x96xf32> to vector<8x8xf32>
    %39 = arith.truncf %38 : vector<8x8xf32> to vector<8x8xbf16>
    %40 = vector.extract_strided_slice %9 {offsets = [0, 40], sizes = [8, 8], strides = [1, 1]} : vector<8x96xf32> to vector<8x8xf32>
    %41 = arith.truncf %40 : vector<8x8xf32> to vector<8x8xbf16>
    %42 = vector.extract_strided_slice %9 {offsets = [0, 72], sizes = [8, 8], strides = [1, 1]} : vector<8x96xf32> to vector<8x8xf32>
    %43 = arith.truncf %42 : vector<8x8xf32> to vector<8x8xbf16>
    %cst_18 = arith.constant dense<0.000000e+00> : vector<8x8xf32>
    %44 = tpu.matmul %39, %41, %cst_18 {dimension_numbers = #tpu.dot_dimension_numbers<[1], [1], [0], [0], [0, 0, 1, 0], [], []>} : vector<8x8xbf16>, vector<8x8xbf16>, vector<8x8xf32> -> vector<8x8xf32>
    %cst_19 = arith.constant 0.353553385 : f32
    %45 = vector.broadcast %cst_19 : f32 to vector<8x8xf32>
    %46 = arith.mulf %44, %45 : vector<8x8xf32>
    %47 = vector.broadcast %3 : vector<1x8xf32> to vector<8x8xf32>
    %48 = arith.addf %46, %47 : vector<8x8xf32>
    %cst_20 = arith.constant dense<0xFF800000> : vector<8xf32>
    %49 = vector.multi_reduction <maximumf>, %48, %cst_20 [1] : vector<8x8xf32> to vector<8xf32>
    %50 = vector.shape_cast %49 : vector<8xf32> to vector<8x1xf32>
    %51 = vector.broadcast %50 : vector<8x1xf32> to vector<8x8xf32>
    %52 = arith.subf %48, %51 : vector<8x8xf32>
    %53 = math.exp %52 : vector<8x8xf32>
    %cst_21 = arith.constant dense<0.000000e+00> : vector<8xf32>
    %54 = vector.multi_reduction <add>, %53, %cst_21 [1] : vector<8x8xf32> to vector<8xf32>
    %55 = vector.shape_cast %54 : vector<8xf32> to vector<8x1xf32>
    %56 = tpu.reciprocal %55 {approx = true} : vector<8x1xf32> -> vector<8x1xf32>
    %57 = vector.broadcast %56 : vector<8x1xf32> to vector<8x8xf32>
    %58 = arith.mulf %53, %57 : vector<8x8xf32>
    %59 = arith.truncf %58 : vector<8x8xf32> to vector<8x8xbf16>
    %cst_22 = arith.constant dense<0.000000e+00> : vector<8x8xf32>
    %60 = tpu.matmul %59, %43, %cst_22 {dimension_numbers = #tpu.dot_dimension_numbers<[1], [0], [0], [1], [0, 0, 1, 1], [], []>} : vector<8x8xbf16>, vector<8x8xbf16>, vector<8x8xf32> -> vector<8x8xf32>
    %61 = arith.truncf %60 : vector<8x8xf32> to vector<8x8xbf16>
    %c8 = arith.constant 8 : index
    %c0_23 = arith.constant 0 : index
    %62 = vector.load %arg5[%c8, %c0_23] : memref<32x32xbf16, #tpu.memory_space<vmem>>, vector<8x32xbf16>
    %cst_24 = arith.constant dense<0.000000e+00> : vector<8x32xf32>
    %63 = tpu.matmul %61, %62, %cst_24 {dimension_numbers = #tpu.dot_dimension_numbers<[1], [0], [0], [1], [0, 0, 1, 1], [], []>} : vector<8x8xbf16>, vector<8x32xbf16>, vector<8x32xf32> -> vector<8x32xf32>
    %64 = arith.addf %37, %63 : vector<8x32xf32>
    %65 = vector.extract_strided_slice %9 {offsets = [0, 16], sizes = [8, 8], strides = [1, 1]} : vector<8x96xf32> to vector<8x8xf32>
    %66 = arith.truncf %65 : vector<8x8xf32> to vector<8x8xbf16>
    %67 = vector.extract_strided_slice %9 {offsets = [0, 48], sizes = [8, 8], strides = [1, 1]} : vector<8x96xf32> to vector<8x8xf32>
    %68 = arith.truncf %67 : vector<8x8xf32> to vector<8x8xbf16>
    %69 = vector.extract_strided_slice %9 {offsets = [0, 80], sizes = [8, 8], strides = [1, 1]} : vector<8x96xf32> to vector<8x8xf32>
    %70 = arith.truncf %69 : vector<8x8xf32> to vector<8x8xbf16>
    %cst_25 = arith.constant dense<0.000000e+00> : vector<8x8xf32>
    %71 = tpu.matmul %66, %68, %cst_25 {dimension_numbers = #tpu.dot_dimension_numbers<[1], [1], [0], [0], [0, 0, 1, 0], [], []>} : vector<8x8xbf16>, vector<8x8xbf16>, vector<8x8xf32> -> vector<8x8xf32>
    %cst_26 = arith.constant 0.353553385 : f32
    %72 = vector.broadcast %cst_26 : f32 to vector<8x8xf32>
    %73 = arith.mulf %71, %72 : vector<8x8xf32>
    %74 = vector.broadcast %3 : vector<1x8xf32> to vector<8x8xf32>
    %75 = arith.addf %73, %74 : vector<8x8xf32>
    %cst_27 = arith.constant dense<0xFF800000> : vector<8xf32>
    %76 = vector.multi_reduction <maximumf>, %75, %cst_27 [1] : vector<8x8xf32> to vector<8xf32>
    %77 = vector.shape_cast %76 : vector<8xf32> to vector<8x1xf32>
    %78 = vector.broadcast %77 : vector<8x1xf32> to vector<8x8xf32>
    %79 = arith.subf %75, %78 : vector<8x8xf32>
    %80 = math.exp %79 : vector<8x8xf32>
    %cst_28 = arith.constant dense<0.000000e+00> : vector<8xf32>
    %81 = vector.multi_reduction <add>, %80, %cst_28 [1] : vector<8x8xf32> to vector<8xf32>
    %82 = vector.shape_cast %81 : vector<8xf32> to vector<8x1xf32>
    %83 = tpu.reciprocal %82 {approx = true} : vector<8x1xf32> -> vector<8x1xf32>
    %84 = vector.broadcast %83 : vector<8x1xf32> to vector<8x8xf32>
    %85 = arith.mulf %80, %84 : vector<8x8xf32>
    %86 = arith.truncf %85 : vector<8x8xf32> to vector<8x8xbf16>
    %cst_29 = arith.constant dense<0.000000e+00> : vector<8x8xf32>
    %87 = tpu.matmul %86, %70, %cst_29 {dimension_numbers = #tpu.dot_dimension_numbers<[1], [0], [0], [1], [0, 0, 1, 1], [], []>} : vector<8x8xbf16>, vector<8x8xbf16>, vector<8x8xf32> -> vector<8x8xf32>
    %88 = arith.truncf %87 : vector<8x8xf32> to vector<8x8xbf16>
    %c16 = arith.constant 16 : index
    %c0_30 = arith.constant 0 : index
    %89 = vector.load %arg5[%c16, %c0_30] : memref<32x32xbf16, #tpu.memory_space<vmem>>, vector<8x32xbf16>
    %cst_31 = arith.constant dense<0.000000e+00> : vector<8x32xf32>
    %90 = tpu.matmul %88, %89, %cst_31 {dimension_numbers = #tpu.dot_dimension_numbers<[1], [0], [0], [1], [0, 0, 1, 1], [], []>} : vector<8x8xbf16>, vector<8x32xbf16>, vector<8x32xf32> -> vector<8x32xf32>
    %91 = arith.addf %64, %90 : vector<8x32xf32>
    %92 = vector.extract_strided_slice %9 {offsets = [0, 24], sizes = [8, 8], strides = [1, 1]} : vector<8x96xf32> to vector<8x8xf32>
    %93 = arith.truncf %92 : vector<8x8xf32> to vector<8x8xbf16>
    %94 = vector.extract_strided_slice %9 {offsets = [0, 56], sizes = [8, 8], strides = [1, 1]} : vector<8x96xf32> to vector<8x8xf32>
    %95 = arith.truncf %94 : vector<8x8xf32> to vector<8x8xbf16>
    %96 = vector.extract_strided_slice %9 {offsets = [0, 88], sizes = [8, 8], strides = [1, 1]} : vector<8x96xf32> to vector<8x8xf32>
    %97 = arith.truncf %96 : vector<8x8xf32> to vector<8x8xbf16>
    %cst_32 = arith.constant dense<0.000000e+00> : vector<8x8xf32>
    %98 = tpu.matmul %93, %95, %cst_32 {dimension_numbers = #tpu.dot_dimension_numbers<[1], [1], [0], [0], [0, 0, 1, 0], [], []>} : vector<8x8xbf16>, vector<8x8xbf16>, vector<8x8xf32> -> vector<8x8xf32>
    %cst_33 = arith.constant 0.353553385 : f32
    %99 = vector.broadcast %cst_33 : f32 to vector<8x8xf32>
    %100 = arith.mulf %98, %99 : vector<8x8xf32>
    %101 = vector.broadcast %3 : vector<1x8xf32> to vector<8x8xf32>
    %102 = arith.addf %100, %101 : vector<8x8xf32>
    %cst_34 = arith.constant dense<0xFF800000> : vector<8xf32>
    %103 = vector.multi_reduction <maximumf>, %102, %cst_34 [1] : vector<8x8xf32> to vector<8xf32>
    %104 = vector.shape_cast %103 : vector<8xf32> to vector<8x1xf32>
    %105 = vector.broadcast %104 : vector<8x1xf32> to vector<8x8xf32>
    %106 = arith.subf %102, %105 : vector<8x8xf32>
    %107 = math.exp %106 : vector<8x8xf32>
    %cst_35 = arith.constant dense<0.000000e+00> : vector<8xf32>
    %108 = vector.multi_reduction <add>, %107, %cst_35 [1] : vector<8x8xf32> to vector<8xf32>
    %109 = vector.shape_cast %108 : vector<8xf32> to vector<8x1xf32>
    %110 = tpu.reciprocal %109 {approx = true} : vector<8x1xf32> -> vector<8x1xf32>
    %111 = vector.broadcast %110 : vector<8x1xf32> to vector<8x8xf32>
    %112 = arith.mulf %107, %111 : vector<8x8xf32>
    %113 = arith.truncf %112 : vector<8x8xf32> to vector<8x8xbf16>
    %cst_36 = arith.constant dense<0.000000e+00> : vector<8x8xf32>
    %114 = tpu.matmul %113, %97, %cst_36 {dimension_numbers = #tpu.dot_dimension_numbers<[1], [0], [0], [1], [0, 0, 1, 1], [], []>} : vector<8x8xbf16>, vector<8x8xbf16>, vector<8x8xf32> -> vector<8x8xf32>
    %115 = arith.truncf %114 : vector<8x8xf32> to vector<8x8xbf16>
    %c24 = arith.constant 24 : index
    %c0_37 = arith.constant 0 : index
    %116 = vector.load %arg5[%c24, %c0_37] : memref<32x32xbf16, #tpu.memory_space<vmem>>, vector<8x32xbf16>
    %cst_38 = arith.constant dense<0.000000e+00> : vector<8x32xf32>
    %117 = tpu.matmul %115, %116, %cst_38 {dimension_numbers = #tpu.dot_dimension_numbers<[1], [0], [0], [1], [0, 0, 1, 1], [], []>} : vector<8x8xbf16>, vector<8x32xbf16>, vector<8x32xf32> -> vector<8x32xf32>
    %118 = arith.addf %91, %117 : vector<8x32xf32>
    %c0_39 = arith.constant 0 : index
    %c0_40 = arith.constant 0 : index
    %119 = vector.load %arg6[%c0_39, %c0_40] : memref<1x32xf32, #tpu.memory_space<vmem>>, vector<1x32xf32>
    %120 = vector.broadcast %119 : vector<1x32xf32> to vector<8x32xf32>
    %121 = arith.addf %118, %120 : vector<8x32xf32>
    %122 = arith.addf %121, %1 : vector<8x32xf32>
    %c0_41 = arith.constant 0 : index
    %c0_42 = arith.constant 0 : index
    %123 = vector.load %arg7[%c0_41, %c0_42] : memref<1x32xf32, #tpu.memory_space<vmem>>, vector<1x32xf32>
    %c0_43 = arith.constant 0 : index
    %c0_44 = arith.constant 0 : index
    %124 = vector.load %arg8[%c0_43, %c0_44] : memref<1x32xf32, #tpu.memory_space<vmem>>, vector<1x32xf32>
    %cst_45 = arith.constant dense<0.000000e+00> : vector<8xf32>
    %125 = vector.multi_reduction <add>, %122, %cst_45 [1] : vector<8x32xf32> to vector<8xf32>
    %126 = vector.shape_cast %125 : vector<8xf32> to vector<8x1xf32>
    %cst_46 = arith.constant 3.200000e+01 : f32
    %127 = vector.broadcast %cst_46 : f32 to vector<8x1xf32>
    %128 = arith.divf %126, %127 : vector<8x1xf32>
    %129 = vector.broadcast %128 : vector<8x1xf32> to vector<8x32xf32>
    %130 = arith.subf %122, %129 : vector<8x32xf32>
    %131 = arith.mulf %130, %130 : vector<8x32xf32>
    %cst_47 = arith.constant dense<0.000000e+00> : vector<8xf32>
    %132 = vector.multi_reduction <add>, %131, %cst_47 [1] : vector<8x32xf32> to vector<8xf32>
    %133 = vector.shape_cast %132 : vector<8xf32> to vector<8x1xf32>
    %cst_48 = arith.constant 3.200000e+01 : f32
    %134 = vector.broadcast %cst_48 : f32 to vector<8x1xf32>
    %135 = arith.divf %133, %134 : vector<8x1xf32>
    %cst_49 = arith.constant 9.99999996E-13 : f32
    %136 = vector.broadcast %cst_49 : f32 to vector<8x1xf32>
    %137 = arith.addf %135, %136 : vector<8x1xf32>
    %138 = math.rsqrt %137 : vector<8x1xf32>
    %139 = vector.broadcast %138 : vector<8x1xf32> to vector<8x32xf32>
    %140 = arith.mulf %130, %139 : vector<8x32xf32>
    %141 = vector.broadcast %123 : vector<1x32xf32> to vector<8x32xf32>
    %142 = arith.mulf %140, %141 : vector<8x32xf32>
    %143 = vector.broadcast %124 : vector<1x32xf32> to vector<8x32xf32>
    %144 = arith.addf %142, %143 : vector<8x32xf32>
    %c0_50 = arith.constant 0 : index
    %c0_51 = arith.constant 0 : index
    %c0_52 = arith.constant 0 : index
    %145 = vector.load %arg9[%c0_50, %c0_51, %c0_52] : memref<1x8x32xf32, #tpu.memory_space<vmem>>, vector<1x8x32xf32>
    %146 = vector.shape_cast %145 : vector<1x8x32xf32> to vector<8x32xf32>
    %147 = vector.shape_cast %144 : vector<8x32xf32> to vector<1x8x32xf32>
    tpu.vector_store %arg9[%c0_50, %c0_51, %c0_52], %147 {strides = array<i32>} : memref<1x8x32xf32, #tpu.memory_space<vmem>>, vector<1x8x32xf32>,
    return
  }
  func.func @transform_0(%arg0: i32) -> (i32, i32, i32) {
    %c0_i32 = arith.constant 0 : i32
    %c0_i32_0 = arith.constant 0 : i32
    %c0_i32_1 = arith.constant 0 : i32
    return %arg0, %c0_i32, %c0_i32_0 : i32, i32, i32
  }
  func.func @transform_1(%arg0: i32) -> (i32, i32, i32) {
    %c0_i32 = arith.constant 0 : i32
    %c0_i32_0 = arith.constant 0 : i32
    %c0_i32_1 = arith.constant 0 : i32
    return %arg0, %c0_i32, %c0_i32_0 : i32, i32, i32
  }
  func.func @transform_2(%arg0: i32) -> (i32, i32) {
    %c0_i32 = arith.constant 0 : i32
    %c0_i32_0 = arith.constant 0 : i32
    %c0_i32_1 = arith.constant 0 : i32
    return %c0_i32, %c0_i32_0 : i32, i32
  }
  func.func @transform_3(%arg0: i32) -> (i32, i32) {
    %c0_i32 = arith.constant 0 : i32
    %c0_i32_0 = arith.constant 0 : i32
    %c0_i32_1 = arith.constant 0 : i32
    return %c0_i32, %c0_i32_0 : i32, i32
  }
  func.func @transform_4(%arg0: i32) -> (i32, i32) {
    %c0_i32 = arith.constant 0 : i32
    %c0_i32_0 = arith.constant 0 : i32
    %c0_i32_1 = arith.constant 0 : i32
    return %c0_i32, %c0_i32_0 : i32, i32
  }
  func.func @transform_5(%arg0: i32) -> (i32, i32) {
    %c0_i32 = arith.constant 0 : i32
    %c0_i32_0 = arith.constant 0 : i32
    %c0_i32_1 = arith.constant 0 : i32
    return %c0_i32, %c0_i32_0 : i32, i32
  }
  func.func @transform_6(%arg0: i32) -> (i32, i32) {
    %c0_i32 = arith.constant 0 : i32
    %c0_i32_0 = arith.constant 0 : i32
    %c0_i32_1 = arith.constant 0 : i32
    return %c0_i32, %c0_i32_0 : i32, i32
  }
  func.func @transform_7(%arg0: i32) -> (i32, i32) {
    %c0_i32 = arith.constant 0 : i32
    %c0_i32_0 = arith.constant 0 : i32
    %c0_i32_1 = arith.constant 0 : i32
    return %c0_i32, %c0_i32_0 : i32, i32
  }
  func.func @transform_8(%arg0: i32) -> (i32, i32, i32) {
    %c0_i32 = arith.constant 0 : i32
    %c0_i32_0 = arith.constant 0 : i32
    %c0_i32_1 = arith.constant 0 : i32
    return %arg0, %c0_i32, %c0_i32_0 : i32, i32, i32
  }
}

module attributes {stable_mosaic.version = 11 : i64} {
  func.func @_head_kernel(%arg0: i32, %arg1: memref<2x32xf32, #tpu.memory_space<vmem>>, %arg2: memref<32x32xbf16, #tpu.memory_space<vmem>>, %arg3: memref<1x32xf32, #tpu.memory_space<vmem>>, %arg4: memref<32x3xbf16, #tpu.memory_space<vmem>>, %arg5: memref<1x3xf32, #tpu.memory_space<vmem>>, %arg6: memref<2x3xf32, #tpu.memory_space<vmem>>) attributes {dimension_semantics = [#tpu.dimension_semantics<arbitrary>], iteration_bounds = array<i64: 1>, scalar_prefetch = 0 : i64, scratch_operands = 0 : i64, tpu.core_type = #tpu.core_type<tc>, window_params = [{pipeline_mode = #tpu.pipeline_mode<synchronous>, transform_indices = @transform_0, window_bounds = array<i64: 2, 32>}, {pipeline_mode = #tpu.pipeline_mode<synchronous>, transform_indices = @transform_1, window_bounds = array<i64: 32, 32>}, {pipeline_mode = #tpu.pipeline_mode<synchronous>, transform_indices = @transform_2, window_bounds = array<i64: 1, 32>}, {pipeline_mode = #tpu.pipeline_mode<synchronous>, transform_indices = @transform_3, window_bounds = array<i64: 32, 3>}, {pipeline_mode = #tpu.pipeline_mode<synchronous>, transform_indices = @transform_4, window_bounds = array<i64: 1, 3>}, {pipeline_mode = #tpu.pipeline_mode<synchronous>, transform_indices = @transform_5, window_bounds = array<i64: 2, 3>}]} {
    %c0 = arith.constant 0 : index
    %c0_0 = arith.constant 0 : index
    %0 = vector.load %arg1[%c0, %c0_0] : memref<2x32xf32, #tpu.memory_space<vmem>>, vector<2x32xf32>
    %1 = arith.truncf %0 : vector<2x32xf32> to vector<2x32xbf16>
    %c0_1 = arith.constant 0 : index
    %c0_2 = arith.constant 0 : index
    %2 = vector.load %arg2[%c0_1, %c0_2] : memref<32x32xbf16, #tpu.memory_space<vmem>>, vector<32x32xbf16>
    %cst = arith.constant dense<0.000000e+00> : vector<2x32xf32>
    %3 = tpu.matmul %1, %2, %cst {dimension_numbers = #tpu.dot_dimension_numbers<[1], [0], [0], [1], [0, 0, 1, 1], [], []>} : vector<2x32xbf16>, vector<32x32xbf16>, vector<2x32xf32> -> vector<2x32xf32>
    %c0_3 = arith.constant 0 : index
    %c0_4 = arith.constant 0 : index
    %4 = vector.load %arg3[%c0_3, %c0_4] : memref<1x32xf32, #tpu.memory_space<vmem>>, vector<1x32xf32>
    %5 = vector.broadcast %4 : vector<1x32xf32> to vector<2x32xf32>
    %6 = arith.addf %3, %5 : vector<2x32xf32>
    %7 = math.tanh %6 : vector<2x32xf32>
    %8 = arith.truncf %7 : vector<2x32xf32> to vector<2x32xbf16>
    %c0_5 = arith.constant 0 : index
    %c0_6 = arith.constant 0 : index
    %9 = vector.load %arg4[%c0_5, %c0_6] : memref<32x3xbf16, #tpu.memory_space<vmem>>, vector<32x3xbf16>
    %cst_7 = arith.constant dense<0.000000e+00> : vector<2x3xf32>
    %10 = tpu.matmul %8, %9, %cst_7 {dimension_numbers = #tpu.dot_dimension_numbers<[1], [0], [0], [1], [0, 0, 1, 1], [], []>} : vector<2x32xbf16>, vector<32x3xbf16>, vector<2x3xf32> -> vector<2x3xf32>
    %c0_8 = arith.constant 0 : index
    %c0_9 = arith.constant 0 : index
    %11 = vector.load %arg5[%c0_8, %c0_9] : memref<1x3xf32, #tpu.memory_space<vmem>>, vector<1x3xf32>
    %12 = vector.broadcast %11 : vector<1x3xf32> to vector<2x3xf32>
    %13 = arith.addf %10, %12 : vector<2x3xf32>
    %c0_10 = arith.constant 0 : index
    %c0_11 = arith.constant 0 : index
    %14 = vector.load %arg6[%c0_10, %c0_11] : memref<2x3xf32, #tpu.memory_space<vmem>>, vector<2x3xf32>
    tpu.vector_store %arg6[%c0_10, %c0_11], %13 {strides = array<i32>} : memref<2x3xf32, #tpu.memory_space<vmem>>, vector<2x3xf32>,
    return
  }
  func.func @transform_0(%arg0: i32) -> (i32, i32) {
    %c0_i32 = arith.constant 0 : i32
    %c0_i32_0 = arith.constant 0 : i32
    %c0_i32_1 = arith.constant 0 : i32
    return %c0_i32, %c0_i32_0 : i32, i32
  }
  func.func @transform_1(%arg0: i32) -> (i32, i32) {
    %c0_i32 = arith.constant 0 : i32
    %c0_i32_0 = arith.constant 0 : i32
    %c0_i32_1 = arith.constant 0 : i32
    return %c0_i32, %c0_i32_0 : i32, i32
  }
  func.func @transform_2(%arg0: i32) -> (i32, i32) {
    %c0_i32 = arith.constant 0 : i32
    %c0_i32_0 = arith.constant 0 : i32
    %c0_i32_1 = arith.constant 0 : i32
    return %c0_i32, %c0_i32_0 : i32, i32
  }
  func.func @transform_3(%arg0: i32) -> (i32, i32) {
    %c0_i32 = arith.constant 0 : i32
    %c0_i32_0 = arith.constant 0 : i32
    %c0_i32_1 = arith.constant 0 : i32
    return %c0_i32, %c0_i32_0 : i32, i32
  }
  func.func @transform_4(%arg0: i32) -> (i32, i32) {
    %c0_i32 = arith.constant 0 : i32
    %c0_i32_0 = arith.constant 0 : i32
    %c0_i32_1 = arith.constant 0 : i32
    return %c0_i32, %c0_i32_0 : i32, i32
  }
  func.func @transform_5(%arg0: i32) -> (i32, i32) {
    %c0_i32 = arith.constant 0 : i32
    %c0_i32_0 = arith.constant 0 : i32
    %c0_i32_1 = arith.constant 0 : i32
    return %c0_i32, %c0_i32_0 : i32, i32
  }
}

</mosaic_0001>

<bundles_post_ra>
// kernel: bert_classifier_forward.7
= control target key start
LH: loop header
LB: loop body
LE: loop exit
PB: predicated region body
PF: predicated region fallthrough
CT: control target
= control target key end

     0   :  { %s929_s27 = smov 0   ;;  %s1057_s0 = inlined_call_operand.vmem [shape: f32[2,8,32], index: 0, kind: input, shape index: {}]   ;;  %s1058_s1 = inlined_call_operand.vmem [shape: f32[2,1,8], index: 1, kind: input, shape index: {}]   ;;  %s1059_s2 = inlined_call_operand.vmem [shape: bf16[32,96], index: 2, kind: input, shape index: {}]   ;;  %s1060_s3 = inlined_call_operand.vmem [shape: f32[1,96], index: 3, kind: input, shape index: {}]   ;;  %s1061_s4 = inlined_call_operand.vmem [shape: bf16[32,32], index: 4, kind: input, shape index: {}]   ;;  %s1062_s5 = inlined_call_operand.vmem [shape: f32[1,32], index: 5, kind: input, shape index: {}]   ;;  %s1063_s6 = inlined_call_operand.vmem [shape: f32[1,32], index: 6, kind: input, shape index: {}]   ;;  %s1064_s7 = inlined_call_operand.vmem [shape: f32[1,32], index: 7, kind: input, shape index: {}]   ;;  %s1065_s8 = inlined_call_operand.vmem [shape: f32[2,8,32], index: 8, kind: output, shape index: {}]  }
   0x1 LB: > { %s787_s28 = sadd.s32 4294967295, %s870_s27   ;;  %p791_p0 = scmp.ge.s32.totalorder %s870_s27, 1  ;;  %s870_s27 = sphi %s929_s27, %s18_s27  }
   0x2   : > { %p269_p1 = scmp.lt.s32.totalorder %s870_s27, 3 }
   0x4   : > { %p270_p2 = pnand %p791_p0, %p269_p1 }
   0x5   : > { %p304_p3 = scmp.lt.s32.totalorder (!%p270_p2), %s787_s28, 1  ;;  %s872_s20 = smov (!%p270_p2), 88  }
   0x6   : > { %273 = sbr.rel (%p270_p2) target bundleno = 1752 (0x6d8), region = 52  ;;  %s873_s21 = smov (!%p270_p2), 96  }
   0x7   : > { %s874_s22 = smov (!%p270_p2), 120   ;;  %s875_s23 = smov (!%p270_p2), 80  }
   0x8   : > { %s876_s24 = smov (!%p270_p2), 72   ;;  %s877_s25 = smov (!%p270_p2), 112  }
   0x9   : > { %s878_s10 = smov (!%p270_p2), 56   ;;  %s879_s12 = smov (!%p270_p2), 40  }
   0xa   : > { %s880_s13 = smov (!%p270_p2), 64  }
   0xb   : > { %v818_v0 = vld [vmem:[%s1059_s2 + $0x8] sm:$0xff]  ;;  %v817_v1 = vld [vmem:[%s1059_s2] sm:$0xff]  ;;  %s1067_s28 = smov (!%p304_p3, %s787_s28), 1  ;;  %vm339_vm0 = vcmask 261120   ;;  %vm360_vm1 = vcmask 64512   ;;  %vm402_vm2 = vcmask 1043456  }
   0xc   : > { %349 = vmatpush.bf16.msra.mxu0 %v818_v0  ;;  %s792_s11 = sshll.u32 %s1067_s28, 3  ;;  %s310_s14 = scalar_lea.vmem %s1058_s1, %s1067_s28  ;;  %v839_v4 = vld [vmem:[%s1060_s3] ss:$0 sm:$0xff]  ;;  %v480_v62 = vld [vmem:[%s1061_s4 + $0x4] sm:$0xf] }
   0xd   : > { %s307_s17 = scalar_lea.vmem %s1057_s0, %s792_s11  ;;  %v420_v14 = vld [vmem:[%s1061_s4] sm:$0xf]  ;;  %v485_v63 = vsel %vm402_vm2, %v480_v62, 0 }
   0xe   : > { %v955_v2 = vld [vmem:[%s307_s17] sm:$0xff]  ;;  %v504_v17 = vsel %vm402_vm2, %v420_v14, 0  ;;  %s882_s17 = smov 48  }
   0xf   : > { %v318_v3 = vpack.c.bf16 %v955_v2, %v955_v2  ;;  %v988_v21 = vld [vmem:[%s310_s14] ss:$0 sm:$0xff]  ;;  %s881_s14 = smov 104  }
  0x10   : > { %350 = vmatpush.bf16.msra.mxu0 %v817_v1 }
  0x13   : > { %802 = vmatmul.msk.bf16.vlgmr.msra.gmra.mxu0 %vm339_vm0, %v318_v3 }
  0x14   : > { %494 = vmatpush.bf16.msrb.mxu0 %v485_v63 }
  0x90   : > { %v352_v5 = vpop.f32.mrf.mxu0 }
  0x91   : > { %v353_v6 = vadd.f32 %v839_v4, %v352_v5 }
  0x93   : > { %v963_v7 = vpack.c.bf16 %v353_v6, %v353_v6 }
  0x95   : > { %423 = vrot.lane.b32.xlu2 %v963_v7, %s872_s20  ;;  %358 = vrot.lane.b32.xlu0 %v963_v7, %s873_s21 }
  0x98   : > { %v354_v8 = vpop.f32.mrf.mxu0 }
  0x9d   : > { %421 = vrot.lane.b32.xlu2 %v963_v7, %s874_s22 }
  0xa5   : > { %521 = vrot.lane.b32.xlu2 %v963_v7, %s875_s23 }
  0xad   : > { %601 = vrot.lane.b32.xlu2 %v963_v7, %s876_s24 }
  0xb5   : > { %519 = vrot.lane.b32.xlu2 %v963_v7, %s877_s25 }
  0xef   : > { %v424_v9 = vpop.permute.xlu2 %423 }
  0xf0   : > { %v429_v10 = vsel %vm360_vm1, %v424_v9, 0 }
  0xf1   : > { %438 = vmatpush.bf16.xpose.msra.mxu3 %v429_v10 }
  0xf7   : > { %v422_v11 = vpop.permute.xlu2 %421 }
  0xf8   : > { %805 = vmatmul.msk.bf16.vlgmr.msra.gmra.mxu3 %vm360_vm1, %v422_v11 }
  0xff   : > { %v522_v12 = vpop.permute.xlu2 %521 }
 0x100   : > { %v527_v13 = vsel %vm360_vm1, %v522_v12, 0 }
 0x101   : > { %536 = vmatpush.bf16.xpose.msrb.mxu3 %v527_v13 }
 0x107   : > { %v602_v15 = vpop.permute.xlu2 %601  ;;  %v359_v16 = vpop.permute.xlu0 %358 }
 0x108   : > { %v365_v18 = vsel %vm360_vm1, %v359_v16, 0  ;;  %v607_v20 = vsel %vm360_vm1, %v602_v15, 0 }
 0x109   : > { %374 = vmatpush.bf16.xpose.msra.mxu1 %v365_v18 }
 0x10f   : > { %v520_v19 = vpop.permute.xlu2 %519 }
 0x110   : > { %803 = vmatmul.msk.bf16.vlgmr.msra.gmra.mxu1 %vm360_vm1, %v963_v7  ;;  %809 = vmatmul.msk.bf16.vlgmr.msrb.gmra.mxu3 %vm360_vm1, %v520_v19 }
 0x111   : > { %513 = vmatpush.bf16.msrb.mxu1 %v504_v17 }
 0x115   : > { %616 = vmatpush.bf16.xpose.msra.mxu1 %v607_v20 }
 0x17b   : > { %v440_v22 = vpop.f32.mrf.mxu3 }
 0x17c   : > { %v444_v23 = vmul.f32 0.35355338, %v440_v22 }
 0x17e   : > { %v445_v24 = vadd.f32 %v988_v21, %v444_v23 }
 0x180   : > { %v446_v25 = vsel %vm360_vm1, %v445_v24, -inf }
 0x181   : > { %447 = vmax.xlane.f32.xlu2 %v446_v25 }
 0x183   : > { %v442_v26 = vpop.f32.mrf.mxu3 }
 0x18d   : > { %v376_v27 = vpop.f32.mrf.mxu1 }
 0x18e   : > { %v380_v28 = vmul.f32 0.35355338, %v376_v27 }
 0x190   : > { %v384_v29 = vadd.f32 %v988_v21, %v380_v28 }
 0x192   : > { %v385_v30 = vsel %vm360_vm1, %v384_v29, -inf }
 0x193   : > { %v538_v31 = vpop.f32.mrf.mxu3  ;;  %386 = vmax.xlane.f32.xlu0 %v385_v30 }
 0x194   : > { %v542_v32 = vmul.f32 0.35355338, %v538_v31  ;;  %v658_v31 = vld [vmem:[%s1061_s4 + $0xc] sm:$0xf] }
 0x195   : > { %v378_v33 = vpop.f32.mrf.mxu1 }
 0x196   : > { %v995_v34 = vadd.f32 %v988_v21, %v542_v32 }
 0x198   : > { %v544_v35 = vsel %vm360_vm1, %v995_v34, -inf }
 0x19b   : > { %v540_v36 = vpop.f32.mrf.mxu3  ;;  %545 = vmax.xlane.f32.xlu0 %v544_v35 }
 0x19c   : > { %v663_v36 = vsel %vm402_vm2, %v658_v31, 0 }
 0x1f4   : > { %v448_v37 = vpop.xlane.xlu2 %447 }
 0x1f5   : > { %v449_v38 = vsub.f32 %v445_v24, %v448_v37 }
 0x1f7   : > { %v450_v39 = vmul.f32 1.442695, %v449_v38 }
 0x1f9   : > { %844 = vpow2.f32 %v450_v39  ;;  %v578_v39 = vld [vmem:[%s1061_s4 + $0x8] sm:$0xf] }
 0x1ff   : > { %v845_v40 = vpop.eup %844 }
 0x200   : > { %v452_v41 = vsel %vm360_vm1, %v845_v40, 0.0 }
 0x201   : > { %453 = vadd.xlane.f32.xlu0 %v452_v41 }
 0x206   : > { %v387_v42 = vpop.xlane.xlu0 %386 }
 0x207   : > { %v388_v43 = vsub.f32 %v384_v29, %v387_v42 }
 0x209   : > { %v389_v44 = vmul.f32 1.442695, %v388_v43 }
 0x20b   : > { %846 = vpow2.f32 %v389_v44 }
 0x20e   : > { %v546_v47 = vpop.xlane.xlu0 %545 }
 0x20f   : > { %v547_v11 = vsub.f32 %v995_v34, %v546_v47 }
 0x211   : > { %v847_v45 = vpop.eup %846  ;;  %v548_v12 = vmul.f32 1.442695, %v547_v11 }
 0x212   : > { %v391_v46 = vsel %vm360_vm1, %v847_v45, 0.0 }
 0x213   : > { %392 = vadd.xlane.f32.xlu1 %v391_v46 }
 0x215   : > { %458 = vrot.lane.b32.xlu0 %v963_v7, %s878_s10  ;;  %s314_s10 = scalar_lea.vmem %s1065_s8, %s792_s11 }
 0x21d   : > { %636 = vrot.lane.b32.xlu0 %v963_v7, %s879_s12 }
 0x22c   : > { %397 = vrot.lane.b32.xlu1 %v963_v7, %s880_s13 }
 0x234   : > { %599 = vrot.lane.b32.xlu1 %v963_v7, %s881_s14 }
 0x274   : > { %v454_v48 = vpop.xlane.xlu0 %453 }
 0x286   : > { %v393_v52 = vpop.xlane.xlu1 %392 }
 0x287   : > { %v459_v49 = vpop.permute.xlu0 %458  ;;  %848 = vrcp.f32 %v393_v52 }
 0x288   : > { %v464_v57 = vsel %vm402_vm2, %v459_v49, 0  ;;  %850 = vrcp.f32 %v454_v48  ;;  %v841_v49 = vld [vmem:[%s1062_s5] ss:$0 sm:$0xff] }
 0x289   : > { %852 = vpow2.f32 %v548_v12 }
 0x28d   : > { %v849_v53 = vpop.eup %848 }
 0x28e   : > { %v395_v54 = vmul.f32 %v849_v53, %v847_v45  ;;  %v851_v59 = vpop.eup %850 }
 0x28f   : > { %v637_v50 = vpop.permute.xlu0 %636  ;;  %v456_v60 = vmul.f32 %v851_v59, %v845_v40  ;;  %v853_v22 = vpop.eup %852  ;;  %v583_v40 = vsel %vm402_vm2, %v578_v39, 0 }
 0x290   : > { %v642_v51 = vsel %vm402_vm2, %v637_v50, 0  ;;  %v396_v58 = vpack.c.bf16 %v395_v54, %v395_v54  ;;  %v550_v23 = vsel %vm360_vm1, %v853_v22, 0.0  ;;  %592 = vmatpush.bf16.msra.mxu0 %v583_v40 }
 0x291   : > { %651 = vmatpush.bf16.msra.mxu3 %v642_v51  ;;  %v457_v61 = vpack.c.bf16 %v456_v60, %v456_v60 }
 0x29e   : > { %v398_v55 = vpop.permute.xlu1 %397 }
 0x29f   : > { %v404_v56 = vsel %vm402_vm2, %v398_v55, 0 }
 0x2a0   : > { %413 = vmatpush.bf16.msra.mxu2 %v404_v56 }
 0x2a3   : > { %804 = vmatmul.msk.bf16.vlgmr.msra.gmra.mxu2 %vm360_vm1, %v396_v58 }
 0x2a4   : > { %473 = vmatpush.bf16.msrb.mxu2 %v464_v57  ;;  %v883_v57 = vmov 32.0  }
 0x2a6   : > { %v600_v6 = vpop.permute.xlu1 %599 }
 0x2b3   : > { %806 = vmatmul.msk.bf16.vlgmr.msrb.gmra.mxu2 %vm360_vm1, %v457_v61 }
 0x326   : > { %v415_v0 = vpop.f32.mrf.mxu2 }
 0x327   : > { %v419_v1 = vpack.c.bf16 %v415_v0, %v415_v0 }
 0x329   : > { %808 = vmatmul.msk.bf16.vlgmr.msrb.gmra.mxu1 %vm360_vm1, %v419_v1 }
 0x32e   : > { %v417_v3 = vpop.f32.mrf.mxu2 }
 0x336   : > { %v475_v4 = vpop.f32.mrf.mxu2 }
 0x337   : > { %v479_v5 = vpack.c.bf16 %v475_v4, %v475_v4 }
 0x339   : > { %807 = vmatmul.msk.bf16.vlgmr.msrb.gmra.mxu0 %vm360_vm1, %v479_v5  ;;  %812 = vmatmul.msk.bf16.vlgmr.msra.gmra.mxu1 %vm360_vm1, %v600_v6 }
 0x33e   : > { %v477_v8 = vpop.f32.mrf.mxu2 }
 0x3a6   : > { %v515_v9 = vpop.f32.mrf.mxu1 }
 0x3ae   : > { %v517_v10 = vpop.f32.mrf.mxu1 }
 0x3b6   : > { %v496_v13 = vpop.f32.mrf.mxu0  ;;  %v618_v14 = vpop.f32.mrf.mxu1 }
 0x3b7   : > { %v516_v15 = vadd.f32 %v515_v9, %v496_v13  ;;  %v622_v16 = vmul.f32 0.35355338, %v618_v14 }
 0x3b9   : > { %v623_v17 = vadd.f32 %v988_v21, %v622_v16 }
 0x3bb   : > { %v624_v18 = vsel %vm360_vm1, %v623_v17, -inf }
 0x3bc   : > { %625 = vmax.xlane.f32.xlu1 %v624_v18 }
 0x3be   : > { %v498_v19 = vpop.f32.mrf.mxu0  ;;  %v620_v20 = vpop.f32.mrf.mxu1 }
 0x3c4   : > { %551 = vadd.xlane.f32.xlu1 %v550_v23 }
 0x42f   : > { %v626_v24 = vpop.xlane.xlu1 %625 }
 0x430   : > { %v627_v25 = vsub.f32 %v623_v17, %v626_v24  ;;  %v843_v17 = vld [vmem:[%s1064_s7] ss:$0 sm:$0xff] }
 0x432   : > { %v628_v26 = vmul.f32 1.442695, %v627_v25 }
 0x434   : > { %854 = vpow2.f32 %v628_v26 }
 0x437   : > { %v552_v21 = vpop.xlane.xlu1 %551 }
 0x438   : > { %856 = vrcp.f32 %v552_v21 }
 0x43a   : > { %v855_v27 = vpop.eup %854 }
 0x43b   : > { %v630_v28 = vsel %vm360_vm1, %v855_v27, 0.0 }
 0x43c   : > { %631 = vadd.xlane.f32.xlu2 %v630_v28 }
 0x43e   : > { %v857_v30 = vpop.eup %856 }
 0x43f   : > { %v554_v33 = vmul.f32 %v857_v30, %v853_v22 }
 0x454   : > { %556 = vrot.lane.b32.xlu2 %v963_v7, %s882_s17  ;;  %v555_v7 = vpack.c.bf16 %v554_v33, %v554_v33 }
 0x4af   : > { %v632_v29 = vpop.xlane.xlu2 %631 }
 0x4b0   : > { %858 = vrcp.f32 %v632_v29 }
 0x4b1   : > { %860 = vrcp.f32 %v883_v57 }
 0x4b6   : > { %v859_v32 = vpop.eup %858 }
 0x4b7   : > { %v634_v34 = vmul.f32 %v859_v32, %v855_v27  ;;  %v557_v35 = vpop.permute.xlu2 %556  ;;  %v861_v58 = vpop.eup %860 }
 0x4b8   : > { %v562_v37 = vsel %vm402_vm2, %v557_v35, 0  ;;  %v691_v59 = vmul.f32 32.0, %v861_v58  ;;  %vm695_vm3 = vweird.f32 %v861_v58 }
 0x4b9   : > { %v635_v38 = vpack.c.bf16 %v634_v34, %v634_v34  ;;  %571 = vmatpush.bf16.msra.mxu2 %v562_v37 }
 0x4ba   : > { %v692_v60 = vsub.f32 1.0, %v691_v59 }
 0x4bb   : > { %813 = vmatmul.msk.bf16.vlgmr.msra.gmra.mxu3 %vm360_vm1, %v635_v38 }
 0x4bc   : > { %810 = vmatmul.msk.bf16.vlgmr.msra.gmra.mxu2 %vm360_vm1, %v555_v7  ;;  %v693_v61 = vmul.f32 %v861_v58, %v692_v60 }
 0x4bd   : > { %672 = vmatpush.bf16.msrb.mxu2 %v663_v36 }
 0x4be   : > { %v694_v62 = vadd.f32 %v861_v58, %v693_v61 }
 0x4c0   : > { %v696_v63 = vsel %vm695_vm3, %v861_v58, %v694_v62 }
 0x53e   : > { %v653_v41 = vpop.f32.mrf.mxu3 }
 0x53f   : > { %v657_v42 = vpack.c.bf16 %v653_v41, %v653_v41  ;;  %v573_v43 = vpop.f32.mrf.mxu2 }
 0x540   : > { %v577_v44 = vpack.c.bf16 %v573_v43, %v573_v43 }
 0x541   : > { %814 = vmatmul.msk.bf16.vlgmr.msrb.gmra.mxu2 %vm360_vm1, %v657_v42 }
 0x542   : > { %811 = vmatmul.msk.bf16.vlgmr.msra.gmra.mxu0 %vm360_vm1, %v577_v44 }
 0x546   : > { %v655_v45 = vpop.f32.mrf.mxu3 }
 0x547   : > { %v575_v46 = vpop.f32.mrf.mxu2 }
 0x5bf   : > { %v594_v47 = vpop.f32.mrf.mxu0 }
 0x5c0   : > { %v598_v48 = vadd.f32 %v594_v47, %v516_v15  ;;  %v842_v15 = vld [vmem:[%s1063_s6] ss:$0 sm:$0xff] }
 0x5c4   : > { %v674_v50 = vpop.f32.mrf.mxu2 }
 0x5c5   : > { %v678_v51 = vadd.f32 %v674_v50, %v598_v48 }
 0x5c7   : > { %v683_v52 = vadd.f32 %v841_v49, %v678_v51  ;;  %v596_v53 = vpop.f32.mrf.mxu0 }
 0x5c9   : > { %v684_v54 = vadd.f32 %v683_v52, %v955_v2 }
 0x5cb   : > { %v687_v55 = vsel %vm339_vm0, %v684_v54, 0.0 }
 0x5cc   : > { %v676_v56 = vpop.f32.mrf.mxu2  ;;  %688 = vadd.xlane.f32.xlu1 %v687_v55 }
 0x63f   : > { %v689_v0 = vpop.xlane.xlu1 %688 }
 0x640   : > { %v697_v1 = vmul.f32 %v696_v63, %v689_v0 }
 0x642   : > { %v698_v3 = vsub.f32 %v684_v54, %v697_v1 }
 0x644   : > { %v699_v4 = vmul.f32 %v698_v3, %v698_v3 }
 0x646   : > { %v700_v5 = vsel %vm339_vm0, %v699_v4, 0.0 }
 0x647   : > { %701 = vadd.xlane.f32.xlu0 %v700_v5 }
 0x6ba   : > { %v702_v2 = vpop.xlane.xlu0 %701 }
 0x6bb   : > { %v703_v6 = vmul.f32 %v702_v2, %v696_v63 }
 0x6bd   : > { %v704_v8 = vadd.f32 1e-12, %v703_v6 }
 0x6bf   : > { %862 = vrsqrt.f32 %v704_v8  ;;  %vm711_vm5 = vweird.f32 %v704_v8 }
 0x6c5   : > { %v863_v9 = vpop.eup %862 }
 0x6c6   : > { %v706_v10 = vmul.f32 %v863_v9, %v704_v8  ;;  %vm712_vm4 = vweird.f32 %v863_v9 }
 0x6c7   : > { %vm713_vm6 = vmor %vm711_vm5, %vm712_vm4 }
 0x6c8   : > { %v707_v11 = vmul.f32 %v863_v9, %v706_v10 }
 0x6ca   : > { %v708_v12 = vmul.f32 0.5, %v707_v11 }
 0x6cc   : > { %v709_v13 = vsub.f32 1.5, %v708_v12 }
 0x6ce   : > { %v710_v14 = vmul.f32 %v863_v9, %v709_v13 }
 0x6d0   : > { %v714_v16 = vsel %vm713_vm6, %v863_v9, %v710_v14 }
 0x6d1   : > { %v715_v18 = vmul.f32 %v714_v16, %v698_v3 }
 0x6d3   : > { %v719_v19 = vmul.f32 %v842_v15, %v715_v18 }
 0x6d5   : > { %v723_v20 = vadd.f32 %v843_v17, %v719_v19 }
 0x6d7   : > { %724 = vst.msk [vmem:[%s314_s10] sm:$0xff] %vm339_vm0, %v723_v20 }
 0x6d8 PF: > { %s18_s27 = sadd.s32 1, %s870_s27  }
 0x6d9   : > { %p15_p4 = scmp.ge.s32.totalorder %s18_s27, 4  }
 0x6db   :  { %17 = sbr.rel (!%p15_p4) target bundleno = 1 (0x1), region = 85 }

// kernel: bert_classifier_forward.8
= control target key start
LH: loop header
LB: loop body
LE: loop exit
PB: predicated region body
PF: predicated region fallthrough
CT: control target
= control target key end

     0   :  { %s614_s24 = smov 0   ;;  %s679_s0 = inlined_call_operand.vmem [shape: f32[16,32], index: 0, kind: input, shape index: {}]   ;;  %s680_s1 = inlined_call_operand.vmem [shape: bf16[32,64], index: 1, kind: input, shape index: {}]   ;;  %s681_s2 = inlined_call_operand.vmem [shape: f32[1,64], index: 2, kind: input, shape index: {}]   ;;  %s682_s3 = inlined_call_operand.vmem [shape: bf16[64,32], index: 3, kind: input, shape index: {}]   ;;  %s683_s4 = inlined_call_operand.vmem [shape: f32[1,32], index: 4, kind: input, shape index: {}]   ;;  %s684_s5 = inlined_call_operand.vmem [shape: f32[1,32], index: 5, kind: input, shape index: {}]   ;;  %s685_s6 = inlined_call_operand.vmem [shape: f32[1,32], index: 6, kind: input, shape index: {}]   ;;  %s686_s7 = inlined_call_operand.vmem [shape: f32[16,32], index: 7, kind: output, shape index: {}]  }
   0x1 LB: > { %s503_s25 = sadd.s32 4294967295, %s571_s24   ;;  %p507_p0 = scmp.ge.s32.totalorder %s571_s24, 1  ;;  %s571_s24 = sphi %s614_s24, %s17_s24  }
   0x2   : > { %p236_p1 = scmp.lt.s32.totalorder %s571_s24, 3 }
   0x4   : > { %p237_p2 = pnand %p507_p0, %p236_p1 }
   0x5   : > { %p266_p3 = scmp.lt.s32.totalorder (!%p237_p2), %s503_s25, 1 }
   0x6   : > { %240 = sbr.rel (%p237_p2) target bundleno = 603 (0x25b), region = 48 }
   0xb   : > { %v539_v0 = vld [vmem:[%s680_s1 + $0x8] sm:$0xff]  ;;  %v538_v1 = vld [vmem:[%s680_s1] sm:$0xff]  ;;  %s688_s25 = smov (!%p266_p3, %s503_s25), 1  ;;  %vm297_vm0 = vcmask 261120   ;;  %v543_v4 = vld [vmem:[%s682_s3 + $0x18] sm:$0xff]  ;;  %vm392_vm6 = vcmask 523264  }
   0xc   : > { %307 = vmatpush.bf16.msra.mxu0 %v539_v0  ;;  %s508_s30 = sshll.u32 %s688_s25, 3  ;;  %400 = vmatpush.bf16.msra.mxu1 %v543_v4  ;;  %v542_v5 = vld [vmem:[%s682_s3 + $0x10] sm:$0xff]  ;;  %v553_v6 = vld [vmem:[%s681_s2] ss:$0 sm:$0xff]  ;;  %v541_v7 = vld [vmem:[%s682_s3 + $0x8] sm:$0xff]  ;;  %v573_v54 = vmov 32.0  }
   0xd   : > { %s269_s10 = scalar_lea.vmem %s679_s0, %s508_s30  ;;  %v540_v10 = vld [vmem:[%s682_s3] sm:$0xff]  ;;  %s273_s9 = scalar_lea.vmem %s686_s7, %s508_s30 }
   0xe   : > { %v636_v2 = vld [vmem:[%s269_s10] sm:$0xff] }
   0xf   : > { %v276_v3 = vpack.c.bf16 %v636_v2, %v636_v2  ;;  %v554_v48 = vld [vmem:[%s683_s4] ss:$0 sm:$0xff] }
  0x10   : > { %308 = vmatpush.bf16.msra.mxu0 %v538_v1  ;;  %401 = vmatpush.bf16.msra.mxu1 %v542_v5 }
  0x13   : > { %518 = vmatmul.msk.bf16.vlgmr.msra.gmra.mxu0 %vm297_vm0, %v276_v3 }
  0x14   : > { %402 = vmatpush.bf16.msra.mxu1 %v541_v7 }
  0x18   : > { %403 = vmatpush.bf16.msra.mxu1 %v540_v10 }
  0x90   : > { %v310_v8 = vpop.f32.mrf.mxu0 }
  0x91   : > { %v311_v9 = vadd.f32 %v553_v6, %v310_v8 }
  0x93   : > { %v315_v11 = vmul.f32 0.70710677, %v311_v9  ;;  %v314_v44 = vmul.f32 0.5, %v311_v9 }
  0x95   : > { %vm316_vm1 = vcmp.ge.f32.partialorder %v315_v11, 0.0  ;;  %v317_v12 = vsub.f32 0.0, %v315_v11 }
  0x97   : > { %v318_v13 = vsel %vm316_vm1, %v315_v11, %v317_v12  ;;  %v555_v11 = vld [vmem:[%s684_s5] ss:$0 sm:$0xff] }
  0x98   : > { %v319_v14 = vmul.f32 0.3275911, %v318_v13  ;;  %v312_v15 = vpop.f32.mrf.mxu0  ;;  %v345_v26 = vsub.f32 0.0, %v318_v13 }
  0x9a   : > { %v320_v16 = vadd.f32 1.0, %v319_v14  ;;  %v346_v30 = vmul.f32 %v345_v26, %v318_v13  ;;  %v556_v13 = vld [vmem:[%s685_s6] ss:$0 sm:$0xff] }
  0x9c   : > { %557 = vrcp.f32 %v320_v16  ;;  %v332_v20 = vand.u32 2147483648, %v320_v16  ;;  %v330_v22 = vand.u32 2147483647, %v320_v16  ;;  %vm326_vm3 = vweird.f32 %v320_v16 }
  0x9d   : > { %v347_v33 = vmul.f32 1.442695, %v346_v30 }
  0x9e   : > { %v333_v24 = vor.u32 1.1754944e-38, %v332_v20  ;;  %vm331_vm5 = vcmp.eq.f32.partialorder %v330_v22, 8.507059e+37 }
  0x9f   : > { %559 = vpow2.f32 %v347_v33 }
  0xa0   : > { %561 = vrcp.f32 %v573_v54 }
  0xa2   : > { %v558_v17 = vpop.eup %557 }
  0xa3   : > { %v322_v18 = vmul.f32 %v558_v17, %v320_v16  ;;  %vm327_vm2 = vweird.f32 %v558_v17 }
  0xa4   : > { %vm328_vm4 = vmor %vm326_vm3, %vm327_vm2 }
  0xa5   : > { %v323_v19 = vsub.f32 1.0, %v322_v18  ;;  %v560_v39 = vpop.eup %559 }
  0xa6   : > { %v562_v55 = vpop.eup %561 }
  0xa7   : > { %v324_v21 = vmul.f32 %v558_v17, %v323_v19  ;;  %v416_v56 = vmul.f32 32.0, %v562_v55  ;;  %vm420_vm7 = vweird.f32 %v562_v55 }
  0xa9   : > { %v325_v23 = vadd.f32 %v558_v17, %v324_v21  ;;  %v417_v57 = vsub.f32 1.0, %v416_v56 }
  0xab   : > { %v329_v25 = vsel %vm328_vm4, %v558_v17, %v325_v23  ;;  %v418_v58 = vmul.f32 %v562_v55, %v417_v57 }
  0xac   : > { %v334_v27 = vsel %vm331_vm5, %v333_v24, %v329_v25 }
  0xad   : > { %v336_v28 = vmul.f32 1.0614054, %v334_v27  ;;  %v419_v59 = vadd.f32 %v562_v55, %v418_v58 }
  0xaf   : > { %v337_v29 = vadd.f32 -1.4531521, %v336_v28  ;;  %v421_v60 = vsel %vm420_vm7, %v562_v55, %v419_v59 }
  0xb1   : > { %v338_v31 = vmul.f32 %v337_v29, %v334_v27 }
  0xb3   : > { %v339_v32 = vadd.f32 1.4214138, %v338_v31 }
  0xb5   : > { %v340_v34 = vmul.f32 %v339_v32, %v334_v27 }
  0xb7   : > { %v341_v35 = vadd.f32 -0.28449672, %v340_v34 }
  0xb9   : > { %v342_v36 = vmul.f32 %v341_v35, %v334_v27 }
  0xbb   : > { %v343_v37 = vadd.f32 0.2548296, %v342_v36 }
  0xbd   : > { %v344_v38 = vmul.f32 %v343_v37, %v334_v27 }
  0xbf   : > { %v349_v40 = vmul.f32 %v560_v39, %v344_v38 }
  0xc1   : > { %v350_v41 = vsub.f32 1.0, %v349_v40 }
  0xc3   : > { %v351_v42 = vsub.f32 0.0, %v350_v41 }
  0xc5   : > { %v352_v43 = vsel %vm316_vm1, %v350_v41, %v351_v42 }
  0xc6   : > { %v353_v45 = vadd.f32 1.0, %v352_v43 }
  0xc8   : > { %v354_v46 = vmul.f32 %v353_v45, %v314_v44 }
  0xca   : > { %v355_v47 = vpack.c.bf16 %v354_v46, %v354_v46 }
  0xcc   : > { %535 = vmatmul.msk.bf16.vlgmr.msra.gmra.mxu1 %vm392_vm6, %v355_v47 }
 0x149   : > { %v405_v49 = vpop.f32.mrf.mxu1 }
 0x14a   : > { %v406_v50 = vadd.f32 %v554_v48, %v405_v49 }
 0x14c   : > { %v409_v51 = vadd.f32 %v406_v50, %v636_v2 }
 0x14e   : > { %v412_v52 = vsel %vm297_vm0, %v409_v51, 0.0 }
 0x14f   : > { %413 = vadd.xlane.f32.xlu0 %v412_v52 }
 0x151   : > { %v407_v53 = vpop.f32.mrf.mxu1 }
 0x1c2   : > { %v414_v61 = vpop.xlane.xlu0 %413 }
 0x1c3   : > { %v422_v62 = vmul.f32 %v421_v60, %v414_v61 }
 0x1c5   : > { %v423_v63 = vsub.f32 %v409_v51, %v422_v62 }
 0x1c7   : > { %v424_v0 = vmul.f32 %v423_v63, %v423_v63 }
 0x1c9   : > { %v425_v1 = vsel %vm297_vm0, %v424_v0, 0.0 }
 0x1ca   : > { %426 = vadd.xlane.f32.xlu0 %v425_v1 }
 0x23d   : > { %v427_v2 = vpop.xlane.xlu0 %426 }
 0x23e   : > { %v428_v3 = vmul.f32 %v427_v2, %v421_v60 }
 0x240   : > { %v429_v4 = vadd.f32 1e-12, %v428_v3 }
 0x242   : > { %563 = vrsqrt.f32 %v429_v4  ;;  %vm436_vm9 = vweird.f32 %v429_v4 }
 0x248   : > { %v564_v5 = vpop.eup %563 }
 0x249   : > { %v431_v6 = vmul.f32 %v564_v5, %v429_v4  ;;  %vm437_vm8 = vweird.f32 %v564_v5 }
 0x24a   : > { %vm438_vm10 = vmor %vm436_vm9, %vm437_vm8 }
 0x24b   : > { %v432_v7 = vmul.f32 %v564_v5, %v431_v6 }
 0x24d   : > { %v433_v8 = vmul.f32 0.5, %v432_v7 }
 0x24f   : > { %v434_v9 = vsub.f32 1.5, %v433_v8 }
 0x251   : > { %v435_v10 = vmul.f32 %v564_v5, %v434_v9 }
 0x253   : > { %v439_v12 = vsel %vm438_vm10, %v564_v5, %v435_v10 }
 0x254   : > { %v440_v14 = vmul.f32 %v439_v12, %v423_v63 }
 0x256   : > { %v444_v15 = vmul.f32 %v555_v11, %v440_v14 }
 0x258   : > { %v448_v16 = vadd.f32 %v556_v13, %v444_v15 }
 0x25a   : > { %449 = vst.msk [vmem:[%s273_s9] sm:$0xff] %vm297_vm0, %v448_v16 }
 0x25b PF: > { %s17_s24 = sadd.s32 1, %s571_s24  }
 0x25c   : > { %p14_p4 = scmp.ge.s32.totalorder %s17_s24, 4  }
 0x25e   :  { %16 = sbr.rel (!%p14_p4) target bundleno = 1 (0x1), region = 78 }

// kernel: bert_classifier_forward.6
= control target key start
LH: loop header
LB: loop body
LE: loop exit
PB: predicated region body
PF: predicated region fallthrough
CT: control target
= control target key end

     0   :  { %s314_s12 = smov 0   ;;  %s347_s0 = inlined_call_operand.vmem [shape: f32[16,32], index: 0, kind: input, shape index: {}]   ;;  %s348_s1 = inlined_call_operand.vmem [shape: f32[1,32], index: 1, kind: input, shape index: {}]   ;;  %s349_s2 = inlined_call_operand.vmem [shape: f32[1,32], index: 2, kind: input, shape index: {}]   ;;  %s350_s3 = inlined_call_operand.vmem [shape: f32[16,32], index: 3, kind: output, shape index: {}]  }
   0x1 LB: > { %s261_s13 = sadd.s32 4294967295, %s291_s12   ;;  %p265_p0 = scmp.ge.s32.totalorder %s291_s12, 1  ;;  %s291_s12 = sphi %s314_s12, %s13_s12  }
   0x2   : > { %p136_p1 = scmp.lt.s32.totalorder %s291_s12, 3 }
   0x4   : > { %p137_p2 = pnand %p265_p0, %p136_p1 }
   0x5   : > { %p158_p3 = scmp.lt.s32.totalorder (!%p137_p2), %s261_s13, 1 }
   0x6   : > { %140 = sbr.rel (%p137_p2) target bundleno = 284 (0x11c), region = 32 }
   0xb   : > { %s352_s13 = smov (!%p158_p3, %s261_s13), 1  ;;  %vm169_vm0 = vcmask 261120   ;;  %v293_v2 = vmov 32.0   ;;  %v279_v23 = vld [vmem:[%s348_s1] ss:$0 sm:$0xff] }
   0xc   : > { %s266_s14 = sshll.u32 %s352_s13, 3  ;;  %281 = vrcp.f32 %v293_v2  ;;  %v280_v25 = vld [vmem:[%s349_s2] ss:$0 sm:$0xff] }
   0xd   : > { %s161_s17 = scalar_lea.vmem %s347_s0, %s266_s14  ;;  %s165_s24 = scalar_lea.vmem %s350_s3, %s266_s14 }
   0xe   : > { %v166_v0 = vld [vmem:[%s161_s17] sm:$0xff] }
   0xf   : > { %v170_v1 = vsel %vm169_vm0, %v166_v0, 0.0 }
  0x10   : > { %171 = vadd.xlane.f32.xlu0 %v170_v1 }
  0x12   : > { %v282_v3 = vpop.eup %281 }
  0x13   : > { %v174_v4 = vmul.f32 32.0, %v282_v3  ;;  %vm178_vm1 = vweird.f32 %v282_v3 }
  0x15   : > { %v175_v5 = vsub.f32 1.0, %v174_v4 }
  0x17   : > { %v176_v6 = vmul.f32 %v282_v3, %v175_v5 }
  0x19   : > { %v177_v7 = vadd.f32 %v282_v3, %v176_v6 }
  0x1b   : > { %v179_v8 = vsel %vm178_vm1, %v282_v3, %v177_v7 }
  0x83   : > { %v172_v9 = vpop.xlane.xlu0 %171 }
  0x84   : > { %v180_v10 = vmul.f32 %v179_v8, %v172_v9 }
  0x86   : > { %v181_v11 = vsub.f32 %v166_v0, %v180_v10 }
  0x88   : > { %v182_v12 = vmul.f32 %v181_v11, %v181_v11 }
  0x8a   : > { %v183_v13 = vsel %vm169_vm0, %v182_v12, 0.0 }
  0x8b   : > { %184 = vadd.xlane.f32.xlu0 %v183_v13 }
  0xfe   : > { %v185_v14 = vpop.xlane.xlu0 %184 }
  0xff   : > { %v186_v15 = vmul.f32 %v185_v14, %v179_v8 }
 0x101   : > { %v187_v16 = vadd.f32 1e-12, %v186_v15 }
 0x103   : > { %283 = vrsqrt.f32 %v187_v16  ;;  %vm194_vm3 = vweird.f32 %v187_v16 }
 0x109   : > { %v284_v17 = vpop.eup %283 }
 0x10a   : > { %v189_v18 = vmul.f32 %v284_v17, %v187_v16  ;;  %vm195_vm2 = vweird.f32 %v284_v17 }
 0x10b   : > { %vm196_vm4 = vmor %vm194_vm3, %vm195_vm2 }
 0x10c   : > { %v190_v19 = vmul.f32 %v284_v17, %v189_v18 }
 0x10e   : > { %v191_v20 = vmul.f32 0.5, %v190_v19 }
 0x110   : > { %v192_v21 = vsub.f32 1.5, %v191_v20 }
 0x112   : > { %v193_v22 = vmul.f32 %v284_v17, %v192_v21 }
 0x114   : > { %v197_v24 = vsel %vm196_vm4, %v284_v17, %v193_v22 }
 0x115   : > { %v198_v26 = vmul.f32 %v197_v24, %v181_v11 }
 0x117   : > { %v202_v27 = vmul.f32 %v279_v23, %v198_v26 }
 0x119   : > { %v206_v28 = vadd.f32 %v280_v25, %v202_v27 }
 0x11b   : > { %207 = vst.msk [vmem:[%s165_s24] sm:$0xff] %vm169_vm0, %v206_v28 }
 0x11c PF: > { %s13_s12 = sadd.s32 1, %s291_s12  }
 0x11d   : > { %p10_p4 = scmp.ge.s32.totalorder %s13_s12, 4  }
 0x11f   :  { %12 = sbr.rel (!%p10_p4) target bundleno = 1 (0x1), region = 62 }

// kernel: bert_classifier_forward.11
= control target key start
LH: loop header
LB: loop body
LE: loop exit
PB: predicated region body
PF: predicated region fallthrough
CT: control target
= control target key end

     0   :  { %s225_s0 = inlined_call_operand.vmem [shape: f32[2,32], index: 0, kind: input, shape index: {}]   ;;  %s226_s1 = inlined_call_operand.vmem [shape: bf16[32,32], index: 1, kind: input, shape index: {}]   ;;  %s227_s2 = inlined_call_operand.vmem [shape: f32[1,32], index: 2, kind: input, shape index: {}]   ;;  %s228_s3 = inlined_call_operand.vmem [shape: bf16[32,3], index: 3, kind: input, shape index: {}]   ;;  %s229_s4 = inlined_call_operand.vmem [shape: f32[1,3], index: 4, kind: input, shape index: {}]   ;;  %s230_s5 = inlined_call_operand.hbm [shape: f32[2,3], index: 5, kind: output, shape index: {}]  }
   0x1   :  { %v136_v0 = vld [vmem:[%s226_s1 + $0x8] sm:$0xff]  ;;  %v135_v1 = vld [vmem:[%s226_s1] sm:$0xff] }
   0x2   :  { %54 = vmatpush.bf16.msra.mxu0 %v136_v0  ;;  %v22_v2 = vld [vmem:[%s225_s0] sm:$0x3] }
   0x3   :  { %10 = vsyncpa [#allocation3], 0  ;;  %v23_v3 = vpack.c.bf16 %v22_v2, %v22_v2  ;;  %vm44_vm0 = vcmask 261120   ;;  %v138_v4 = vld [vmem:[%s228_s3 + $0x8] sm:$0xff]  ;;  %v137_v5 = vld [vmem:[%s228_s3] sm:$0xff]  ;;  %s170_s30 = smov [#allocation2]  }
   0x4   :  { %92 = vmatpush.bf16.msra.mxu1 %v138_v4  ;;  %v140_v6 = vld [vmem:[%s227_s2] ss:$0 sm:$0xff]  ;;  %s106_s6 = sshll.u32 %s170_s30, 4  ;;  %s108_s8 = sshll.u32 %s230_s5, 4  ;;  %vm99_vm1 = vcmask 17408   ;;  %s107_s6 = int_to_ptr.vmem [resolvable:$true] %s106_s6  ;;  %s109_s8 = int_to_ptr.hbm [resolvable:$true] %s108_s8 }
   0x5   :  { %v141_v12 = vld [vmem:[%s229_s4] ss:$0 sm:$0xff] }
   0x6   :  { %55 = vmatpush.bf16.msra.mxu0 %v135_v1 }
   0x8   :  { %93 = vmatpush.bf16.msra.mxu1 %v137_v5 }
   0x9   :  { %125 = vmatmul.msk.bf16.vlgmr.msra.gmra.mxu0 %vm44_vm0, %v23_v3 }
  0x86   :  { %v57_v7 = vpop.f32.mrf.mxu0 }
  0x87   :  { %v58_v8 = vadd.f32 %v140_v6, %v57_v7 }
  0x89   :  { %142 = vtanh.f32 %v58_v8 }
  0x8e   :  { %v59_v9 = vpop.f32.mrf.mxu0 }
  0x8f   :  { %v143_v10 = vpop.eup %142 }
  0x90   :  { %v62_v11 = vpack.c.bf16 %v143_v10, %v143_v10 }
  0x92   :  { %134 = vmatmul.msk.bf16.vlgmr.msra.gmra.mxu1 %vm44_vm0, %v62_v11 }
 0x10f   :  { %v95_v13 = vpop.f32.mrf.mxu1 }
 0x110   :  { %v96_v14 = vadd.f32 %v141_v12, %v95_v13 }
 0x112   :  { %100 = vst.msk [vmem:[#allocation2] sm:$0x3] %vm99_vm1, %v96_v14 }
 0x113   :  { %111 = dma.vmem_to_hbm [thread:$0]  %s107_s6, 32, %s109_s8, [#allocation3]  }
 0x117   :  { %v97_v15 = vpop.f32.mrf.mxu1 }
 0x118   :  { %168 = dma.done.wait [#allocation3], 32  }
 0x119   :  { %169 = vsyncadd [#allocation3], 4294967264 }
 0x11a   :  { %116 = vsyncpa [#allocation3], 1 }

</bundles_post_ra>
